<compile_context>
chip_gen: v7x
topology: tpu7x:2x2x1
jax: 0.10.0
libtpu: 0.0.40
codegen_flags: <defaults>
</compile_context>

<pallas_src>
import jax
import jax.numpy as jnp
from jax.experimental import pallas as pl
from jax.experimental.pallas import tpu as pltpu

BN_EPS = 1e-5

# Conv hyper-parameters from the PyTorch module.
K1, S1, P1 = 41, 4, 20          # conv1: in_channels -> 16
K2, S2, P2 = 21, 2, 10          # conv2: 16 -> 32   (S2 == 2 -> parity-split h1)
C1_OUT, C2_OUT = 16, 32
FC1_OUT, FC2_OUT, N_CLASSES = 64, 32, 2
OUT_PAD = 128                   # lane-dense padded logits width
SUB = 8                         # sublane granularity (f32)


def fold_bn(conv_b, gamma, beta, mean, var):
    scale = gamma / jnp.sqrt(var + BN_EPS)
    shift = beta + (conv_b - mean) * scale
    return scale.reshape(1, -1), shift.reshape(1, -1)


# ------------------------------ fused kernel --------------------------------

def _make_fused_kernel(Bp, L2, HP, par_info):
    """par_info[r] = (m_lo, n_real, y1_row_start) for parity r in (0, 1)."""

    def kernel(pat1_ref, w1_ref, s1_ref, t1_ref,
               w2_ref, s2_ref, t2_ref,
               fc1w_ref, fc1b_ref, fc2w_ref, fc2b_ref, fc3w_ref, fc3b_ref,
               out_ref, h1_ref):
        # ---- conv1 as ONE GEMM over all (position, padded-batch) rows + BN + ReLU
        y1 = jnp.dot(pat1_ref[...], w1_ref[...], preferred_element_type=jnp.float32)
        y1 = jnp.maximum(y1 * s1_ref[...] + t1_ref[...], 0.0)       # [L1*Bp, 16]

        # ---- scatter into zero-padded, parity-split h1 scratch (all 8-aligned)
        # h1_ref row (r*HP*Bp + m*Bp + b) == h1_padded[b, 2*m + r, :] (channels-last)
        for r, (m_lo, n_real, y_start) in enumerate(par_info):
            base = r * HP * Bp
            lead = m_lo * Bp
            tail = (HP - m_lo - n_real) * Bp
            if lead > 0:                                  # front zero-padding strip
                h1_ref[base:base + lead, :] = jnp.zeros((lead, C1_OUT), jnp.float32)
            h1_ref[base + lead:base + lead + n_real * Bp, :] = \
                y1[y_start:y_start + n_real * Bp, :]
            if tail > 0:                                  # back zero-padding strip
                h1_ref[base + (m_lo + n_real) * Bp:base + HP * Bp, :] = \
                    jnp.zeros((tail, C1_OUT), jnp.float32)

        # ---- conv2: accumulate K2 tap-GEMMs straight from h1 (no im2col scratch)
        y2 = jnp.zeros((L2 * Bp, C2_OUT), jnp.float32)
        for t in range(K2):
            r, s = t % 2, t // 2
            src = (r * HP + s) * Bp                       # 8-aligned contiguous slice
            y2 = y2 + jnp.dot(h1_ref[src:src + L2 * Bp, :],
                              w2_ref[t * C1_OUT:(t + 1) * C1_OUT, :],
                              preferred_element_type=jnp.float32)
        y2 = jnp.maximum(y2 * s2_ref[...] + t2_ref[...], 0.0)       # [L2*Bp, 32]

        # ---- fc1: accumulate over positions (flatten folded into weight order)
        h = jnp.zeros((Bp, FC1_OUT), jnp.float32)
        for l in range(L2):
            h = h + jnp.dot(y2[l * Bp:(l + 1) * Bp, :],
                            fc1w_ref[l * C2_OUT:(l + 1) * C2_OUT, :],
                            preferred_element_type=jnp.float32)
        h = jnp.maximum(h + fc1b_ref[...], 0.0)

        # ---- fc2 / fc3 (dropout1/2 identity under inference), lane-dense output
        h = jnp.dot(h, fc2w_ref[...], preferred_element_type=jnp.float32)
        h = jnp.maximum(h + fc2b_ref[...], 0.0)
        out_ref[...] = (jnp.dot(h, fc3w_ref[...], preferred_element_type=jnp.float32)
                        + fc3b_ref[...])

    return kernel


# ------------------------------ forward wrapper ------------------------------

def conv1dmlp_forward(x, p):
    B, C_in, L = x.shape
    L1 = (L + 2 * P1 - K1) // S1 + 1
    L2 = (L1 + 2 * P2 - K2) // S2 + 1
    HP = L2 + P2                      # half-positions per parity in padded h1
    Bp = -(-B // SUB) * SUB           # batch padded to a sublane multiple

    # ---------------- trace-time glue (cheap, one-off) --------------------------
    # conv1 im2col with rows ordered (parity, position-within-parity, batch) so the
    # kernel scatters conv1's output with two contiguous stores and conv2 reads
    # contiguous, 8-aligned tap slices.
    par_info, pos_order, y_start = [], [], 0
    for r in (0, 1):
        m_lo = -(-(P2 - r) // 2)                      # ceil((P2 - r) / 2)
        m_hi = (P2 + L1 - 1 - r) // 2
        pos = list(range(2 * m_lo + r - P2, 2 * m_hi + r - P2 + 1, 2))
        par_info.append((m_lo, len(pos), y_start))
        pos_order += pos
        y_start += len(pos) * Bp
    assert len(pos_order) == L1

    x_p = jnp.pad(x, ((0, Bp - B), (0, 0), (P1, P1)))                # pad batch + length
    idx = (jnp.asarray(pos_order, dtype=jnp.int32)[:, None] * S1
           + jnp.arange(K1, dtype=jnp.int32)[None, :])               # [L1, K1]
    pat1 = x_p[:, :, idx]                                            # [Bp, C, L1, K1]
    pat1 = jnp.transpose(pat1, (2, 0, 1, 3)).reshape(L1 * Bp, C_in * K1)

    # fold conv bias + BatchNorm (running stats) into per-channel scale/shift
    s1, t1 = fold_bn(p["conv1_b"], p["bn1_gamma"], p["bn1_beta"],
                     p["bn1_mean"], p["bn1_var"])
    s2, t2 = fold_bn(p["conv2_b"], p["bn2_gamma"], p["bn2_beta"],
                     p["bn2_mean"], p["bn2_var"])

    # conv weights as GEMM matrices; row/column orders match in-kernel layouts
    w1m = p["conv1_w"].reshape(C1_OUT, C_in * K1).T                              # [(c,k), 16]
    w2m = jnp.transpose(p["conv2_w"], (0, 2, 1)).reshape(C2_OUT, K2 * C1_OUT).T  # [(t,c1), 32]

    # fc1 permuted so it consumes the channels-last, position-major activation
    fc1_wp = jnp.transpose(p["fc1_w"].reshape(FC1_OUT, C2_OUT, L2),
                           (2, 1, 0)).reshape(L2 * C2_OUT, FC1_OUT)
    fc1_b = p["fc1_b"].reshape(1, -1)
    fc2_wp = p["fc2_w"].T
    fc2_b = p["fc2_b"].reshape(1, -1)
    # pad fc3 to a lane-dense 128-wide projection; slice the 2 logits afterwards
    fc3_wp = jnp.zeros((FC2_OUT, OUT_PAD), jnp.float32).at[:, :N_CLASSES].set(p["fc3_w"].T)
    fc3_b = jnp.zeros((1, OUT_PAD), jnp.float32).at[:, :N_CLASSES].set(p["fc3_b"])

    kernel = _make_fused_kernel(Bp, L2, HP, par_info)
    vmem = lambda: pl.BlockSpec(memory_space=pltpu.MemorySpace.VMEM)
    out = pl.pallas_call(
        kernel,
        out_shape=jax.ShapeDtypeStruct((Bp, OUT_PAD), jnp.float32),
        in_specs=[vmem() for _ in range(13)],
        out_specs=vmem(),
        scratch_shapes=[
            pltpu.VMEM((2 * HP * Bp, C1_OUT), jnp.float32),   # zero-padded parity-split h1
        ],
    )(pat1, w1m, s1, t1, w2m, s2, t2,
      fc1_wp, fc1_b, fc2_wp, fc2_b, fc3_wp, fc3_b)
    return out[:B, :N_CLASSES]


# --------------------------- pure-JAX reference -------------------------------

def ref_forward(x, p):
    def conv1d(x, w, b, stride, pad):
        y = jax.lax.conv_general_dilated(
            x, w, window_strides=(stride,), padding=[(pad, pad)],
            dimension_numbers=("NCH", "OIH", "NCH"))
        return y + b[None, :, None]

    def bn(x, g, be, m, v):
        return (x - m[None, :, None]) / jnp.sqrt(v[None, :, None] + BN_EPS) \
               * g[None, :, None] + be[None, :, None]

    h = jax.nn.relu(bn(conv1d(x, p["conv1_w"], p["conv1_b"], S1, P1),
                       p["bn1_gamma"], p["bn1_beta"], p["bn1_mean"], p["bn1_var"]))
    h = jax.nn.relu(bn(conv1d(h, p["conv2_w"], p["conv2_b"], S2, P2),
                       p["bn2_gamma"], p["bn2_beta"], p["bn2_mean"], p["bn2_var"]))
    flat = h.reshape(h.shape[0], -1)
    h = jax.nn.relu(flat @ p["fc1_w"].T + p["fc1_b"])
    h = jax.nn.relu(h @ p["fc2_w"].T + p["fc2_b"])
    return h @ p["fc3_w"].T + p["fc3_b"]


# ------------------------------ param init ------------------------------------

def init_params(key, in_channels, seq_length):
    conv1_size = (seq_length + 2 * 20 - 41) // 4 + 1
    conv2_size = (conv1_size + 2 * 10 - 21) // 2 + 1
    flatten_size = conv2_size * 32
    ks = jax.random.split(key, 20)
    f32 = jnp.float32
    p = {
        "conv1_w": 0.1 * jax.random.normal(ks[0], (16, in_channels, 41), f32),
        "conv1_b": 0.1 * jax.random.normal(ks[1], (16,), f32),
        "bn1_gamma": 1.0 + 0.1 * jax.random.normal(ks[2], (16,), f32),
        "bn1_beta": 0.1 * jax.random.normal(ks[3], (16,), f32),
        "bn1_mean": 0.1 * jax.random.normal(ks[4], (16,), f32),
        "bn1_var": 1.0 + 0.1 * jnp.abs(jax.random.normal(ks[5], (16,), f32)),
        "conv2_w": 0.05 * jax.random.normal(ks[6], (32, 16, 21), f32),
        "conv2_b": 0.1 * jax.random.normal(ks[7], (32,), f32),
        "bn2_gamma": 1.0 + 0.1 * jax.random.normal(ks[8], (32,), f32),
        "bn2_beta": 0.1 * jax.random.normal(ks[9], (32,), f32),
        "bn2_mean": 0.1 * jax.random.normal(ks[10], (32,), f32),
        "bn2_var": 1.0 + 0.1 * jnp.abs(jax.random.normal(ks[11], (32,), f32)),
        "fc1_w": 0.05 * jax.random.normal(ks[12], (64, flatten_size), f32),
        "fc1_b": 0.1 * jax.random.normal(ks[13], (64,), f32),
        "fc2_w": 0.1 * jax.random.normal(ks[14], (32, 64), f32),
        "fc2_b": 0.1 * jax.random.normal(ks[15], (32,), f32),
        "fc3_w": 0.1 * jax.random.normal(ks[16], (2, 32), f32),
        "fc3_b": 0.1 * jax.random.normal(ks[17], (2,), f32),
    }
    return p


if __name__ == "__main__":
    B, C_IN, SEQ = 2, 2, 128   # small shapes consistent with Conv1DMLP(in_channels=2, seq_length=SEQ)
    key = jax.random.PRNGKey(0)
    kx, kp = jax.random.split(key)
    x = jax.random.normal(kx, (B, C_IN, SEQ), jnp.float32)
    params = init_params(kp, C_IN, SEQ)

    fwd = jax.jit(conv1dmlp_forward)
    out = jax.block_until_ready(fwd(x, params))

    ref = jax.block_until_ready(ref_forward(x, params))
    assert out.shape == (B, N_CLASSES), out.shape
    assert jnp.allclose(out, ref, rtol=1e-4, atol=1e-4), (out, ref)

    print("KERNEL_OK")
</pallas_src>

<mosaic_0001>
module attributes {stable_mosaic.version = 11 : i64} {
  func.func @kernel(%arg0: memref<256x82xf32, #tpu.memory_space<vmem>>, %arg1: memref<82x16xf32, #tpu.memory_space<vmem>>, %arg2: memref<1x16xf32, #tpu.memory_space<vmem>>, %arg3: memref<1x16xf32, #tpu.memory_space<vmem>>, %arg4: memref<336x32xf32, #tpu.memory_space<vmem>>, %arg5: memref<1x32xf32, #tpu.memory_space<vmem>>, %arg6: memref<1x32xf32, #tpu.memory_space<vmem>>, %arg7: memref<512x64xf32, #tpu.memory_space<vmem>>, %arg8: memref<1x64xf32, #tpu.memory_space<vmem>>, %arg9: memref<64x32xf32, #tpu.memory_space<vmem>>, %arg10: memref<1x32xf32, #tpu.memory_space<vmem>>, %arg11: memref<32x128xf32, #tpu.memory_space<vmem>>, %arg12: memref<1x128xf32, #tpu.memory_space<vmem>>, %arg13: memref<8x128xf32, #tpu.memory_space<vmem>>, %arg14: memref<416x16xf32, #tpu.memory_space<vmem>>) attributes {dimension_semantics = [], scalar_prefetch = 0 : i64, scratch_operands = 1 : i64, tpu.core_type = #tpu.core_type<tc>} {
    %c0 = arith.constant 0 : index
    %c0_0 = arith.constant 0 : index
    %0 = vector.load %arg0[%c0, %c0_0] : memref<256x82xf32, #tpu.memory_space<vmem>>, vector<256x82xf32>
    %c0_1 = arith.constant 0 : index
    %c0_2 = arith.constant 0 : index
    %1 = vector.load %arg1[%c0_1, %c0_2] : memref<82x16xf32, #tpu.memory_space<vmem>>, vector<82x16xf32>
    %cst = arith.constant dense<0.000000e+00> : vector<256x16xf32>
    %2 = tpu.matmul %0, %1, %cst {dimension_numbers = #tpu.dot_dimension_numbers<[1], [0], [0], [1], [0, 0, 1, 1], [], []>} : vector<256x82xf32>, vector<82x16xf32>, vector<256x16xf32> -> vector<256x16xf32>
    %c0_3 = arith.constant 0 : index
    %c0_4 = arith.constant 0 : index
    %3 = vector.load %arg2[%c0_3, %c0_4] : memref<1x16xf32, #tpu.memory_space<vmem>>, vector<1x16xf32>
    %4 = vector.broadcast %3 : vector<1x16xf32> to vector<256x16xf32>
    %5 = arith.mulf %2, %4 : vector<256x16xf32>
    %c0_5 = arith.constant 0 : index
    %c0_6 = arith.constant 0 : index
    %6 = vector.load %arg3[%c0_5, %c0_6] : memref<1x16xf32, #tpu.memory_space<vmem>>, vector<1x16xf32>
    %7 = vector.broadcast %6 : vector<1x16xf32> to vector<256x16xf32>
    %8 = arith.addf %5, %7 : vector<256x16xf32>
    %cst_7 = arith.constant 0.000000e+00 : f32
    %9 = vector.broadcast %cst_7 : f32 to vector<256x16xf32>
    %10 = arith.maximumf %8, %9 : vector<256x16xf32>
    %cst_8 = arith.constant 0.000000e+00 : f32
    %11 = vector.broadcast %cst_8 : f32 to vector<40x16xf32>
    %c0_9 = arith.constant 0 : index
    %c0_10 = arith.constant 0 : index
    %12 = vector.load %arg14[%c0_9, %c0_10] : memref<416x16xf32, #tpu.memory_space<vmem>>, vector<40x16xf32>
    tpu.vector_store %arg14[%c0_9, %c0_10], %11 {strides = array<i32>} : memref<416x16xf32, #tpu.memory_space<vmem>>, vector<40x16xf32>,
    %13 = vector.extract_strided_slice %10 {offsets = [0, 0], sizes = [128, 16], strides = [1, 1]} : vector<256x16xf32> to vector<128x16xf32>
    %c40 = arith.constant 40 : index
    %c0_11 = arith.constant 0 : index
    %14 = vector.load %arg14[%c40, %c0_11] : memref<416x16xf32, #tpu.memory_space<vmem>>, vector<128x16xf32>
    tpu.vector_store %arg14[%c40, %c0_11], %13 {strides = array<i32>} : memref<416x16xf32, #tpu.memory_space<vmem>>, vector<128x16xf32>,
    %cst_12 = arith.constant 0.000000e+00 : f32
    %15 = vector.broadcast %cst_12 : f32 to vector<40x16xf32>
    %c168 = arith.constant 168 : index
    %c0_13 = arith.constant 0 : index
    %16 = vector.load %arg14[%c168, %c0_13] : memref<416x16xf32, #tpu.memory_space<vmem>>, vector<40x16xf32>
    tpu.vector_store %arg14[%c168, %c0_13], %15 {strides = array<i32>} : memref<416x16xf32, #tpu.memory_space<vmem>>, vector<40x16xf32>,
    %cst_14 = arith.constant 0.000000e+00 : f32
    %17 = vector.broadcast %cst_14 : f32 to vector<40x16xf32>
    %c208 = arith.constant 208 : index
    %c0_15 = arith.constant 0 : index
    %18 = vector.load %arg14[%c208, %c0_15] : memref<416x16xf32, #tpu.memory_space<vmem>>, vector<40x16xf32>
    tpu.vector_store %arg14[%c208, %c0_15], %17 {strides = array<i32>} : memref<416x16xf32, #tpu.memory_space<vmem>>, vector<40x16xf32>,
    %19 = vector.extract_strided_slice %10 {offsets = [128, 0], sizes = [128, 16], strides = [1, 1]} : vector<256x16xf32> to vector<128x16xf32>
    %c248 = arith.constant 248 : index
    %c0_16 = arith.constant 0 : index
    %20 = vector.load %arg14[%c248, %c0_16] : memref<416x16xf32, #tpu.memory_space<vmem>>, vector<128x16xf32>
    tpu.vector_store %arg14[%c248, %c0_16], %19 {strides = array<i32>} : memref<416x16xf32, #tpu.memory_space<vmem>>, vector<128x16xf32>,
    %cst_17 = arith.constant 0.000000e+00 : f32
    %21 = vector.broadcast %cst_17 : f32 to vector<40x16xf32>
    %c376 = arith.constant 376 : index
    %c0_18 = arith.constant 0 : index
    %22 = vector.load %arg14[%c376, %c0_18] : memref<416x16xf32, #tpu.memory_space<vmem>>, vector<40x16xf32>
    tpu.vector_store %arg14[%c376, %c0_18], %21 {strides = array<i32>} : memref<416x16xf32, #tpu.memory_space<vmem>>, vector<40x16xf32>,
    %cst_19 = arith.constant 0.000000e+00 : f32
    %23 = vector.broadcast %cst_19 : f32 to vector<128x32xf32>
    %c0_20 = arith.constant 0 : index
    %c0_21 = arith.constant 0 : index
    %24 = vector.load %arg14[%c0_20, %c0_21] : memref<416x16xf32, #tpu.memory_space<vmem>>, vector<128x16xf32>
    %c0_22 = arith.constant 0 : index
    %c0_23 = arith.constant 0 : index
    %25 = vector.load %arg4[%c0_22, %c0_23] : memref<336x32xf32, #tpu.memory_space<vmem>>, vector<16x32xf32>
    %cst_24 = arith.constant dense<0.000000e+00> : vector<128x32xf32>
    %26 = tpu.matmul %24, %25, %cst_24 {dimension_numbers = #tpu.dot_dimension_numbers<[1], [0], [0], [1], [0, 0, 1, 1], [], []>} : vector<128x16xf32>, vector<16x32xf32>, vector<128x32xf32> -> vector<128x32xf32>
    %27 = arith.addf %23, %26 : vector<128x32xf32>
    %c208_25 = arith.constant 208 : index
    %c0_26 = arith.constant 0 : index
    %28 = vector.load %arg14[%c208_25, %c0_26] : memref<416x16xf32, #tpu.memory_space<vmem>>, vector<128x16xf32>
    %c16 = arith.constant 16 : index
    %c0_27 = arith.constant 0 : index
    %29 = vector.load %arg4[%c16, %c0_27] : memref<336x32xf32, #tpu.memory_space<vmem>>, vector<16x32xf32>
    %cst_28 = arith.constant dense<0.000000e+00> : vector<128x32xf32>
    %30 = tpu.matmul %28, %29, %cst_28 {dimension_numbers = #tpu.dot_dimension_numbers<[1], [0], [0], [1], [0, 0, 1, 1], [], []>} : vector<128x16xf32>, vector<16x32xf32>, vector<128x32xf32> -> vector<128x32xf32>
    %31 = arith.addf %27, %30 : vector<128x32xf32>
    %c8 = arith.constant 8 : index
    %c0_29 = arith.constant 0 : index
    %32 = vector.load %arg14[%c8, %c0_29] : memref<416x16xf32, #tpu.memory_space<vmem>>, vector<128x16xf32>
    %c32 = arith.constant 32 : index
    %c0_30 = arith.constant 0 : index
    %33 = vector.load %arg4[%c32, %c0_30] : memref<336x32xf32, #tpu.memory_space<vmem>>, vector<16x32xf32>
    %cst_31 = arith.constant dense<0.000000e+00> : vector<128x32xf32>
    %34 = tpu.matmul %32, %33, %cst_31 {dimension_numbers = #tpu.dot_dimension_numbers<[1], [0], [0], [1], [0, 0, 1, 1], [], []>} : vector<128x16xf32>, vector<16x32xf32>, vector<128x32xf32> -> vector<128x32xf32>
    %35 = arith.addf %31, %34 : vector<128x32xf32>
    %c216 = arith.constant 216 : index
    %c0_32 = arith.constant 0 : index
    %36 = vector.load %arg14[%c216, %c0_32] : memref<416x16xf32, #tpu.memory_space<vmem>>, vector<128x16xf32>
    %c48 = arith.constant 48 : index
    %c0_33 = arith.constant 0 : index
    %37 = vector.load %arg4[%c48, %c0_33] : memref<336x32xf32, #tpu.memory_space<vmem>>, vector<16x32xf32>
    %cst_34 = arith.constant dense<0.000000e+00> : vector<128x32xf32>
    %38 = tpu.matmul %36, %37, %cst_34 {dimension_numbers = #tpu.dot_dimension_numbers<[1], [0], [0], [1], [0, 0, 1, 1], [], []>} : vector<128x16xf32>, vector<16x32xf32>, vector<128x32xf32> -> vector<128x32xf32>
    %39 = arith.addf %35, %38 : vector<128x32xf32>
    %c16_35 = arith.constant 16 : index
    %c0_36 = arith.constant 0 : index
    %40 = vector.load %arg14[%c16_35, %c0_36] : memref<416x16xf32, #tpu.memory_space<vmem>>, vector<128x16xf32>
    %c64 = arith.constant 64 : index
    %c0_37 = arith.constant 0 : index
    %41 = vector.load %arg4[%c64, %c0_37] : memref<336x32xf32, #tpu.memory_space<vmem>>, vector<16x32xf32>
    %cst_38 = arith.constant dense<0.000000e+00> : vector<128x32xf32>
    %42 = tpu.matmul %40, %41, %cst_38 {dimension_numbers = #tpu.dot_dimension_numbers<[1], [0], [0], [1], [0, 0, 1, 1], [], []>} : vector<128x16xf32>, vector<16x32xf32>, vector<128x32xf32> -> vector<128x32xf32>
    %43 = arith.addf %39, %42 : vector<128x32xf32>
    %c224 = arith.constant 224 : index
    %c0_39 = arith.constant 0 : index
    %44 = vector.load %arg14[%c224, %c0_39] : memref<416x16xf32, #tpu.memory_space<vmem>>, vector<128x16xf32>
    %c80 = arith.constant 80 : index
    %c0_40 = arith.constant 0 : index
    %45 = vector.load %arg4[%c80, %c0_40] : memref<336x32xf32, #tpu.memory_space<vmem>>, vector<16x32xf32>
    %cst_41 = arith.constant dense<0.000000e+00> : vector<128x32xf32>
    %46 = tpu.matmul %44, %45, %cst_41 {dimension_numbers = #tpu.dot_dimension_numbers<[1], [0], [0], [1], [0, 0, 1, 1], [], []>} : vector<128x16xf32>, vector<16x32xf32>, vector<128x32xf32> -> vector<128x32xf32>
    %47 = arith.addf %43, %46 : vector<128x32xf32>
    %c24 = arith.constant 24 : index
    %c0_42 = arith.constant 0 : index
    %48 = vector.load %arg14[%c24, %c0_42] : memref<416x16xf32, #tpu.memory_space<vmem>>, vector<128x16xf32>
    %c96 = arith.constant 96 : index
    %c0_43 = arith.constant 0 : index
    %49 = vector.load %arg4[%c96, %c0_43] : memref<336x32xf32, #tpu.memory_space<vmem>>, vector<16x32xf32>
    %cst_44 = arith.constant dense<0.000000e+00> : vector<128x32xf32>
    %50 = tpu.matmul %48, %49, %cst_44 {dimension_numbers = #tpu.dot_dimension_numbers<[1], [0], [0], [1], [0, 0, 1, 1], [], []>} : vector<128x16xf32>, vector<16x32xf32>, vector<128x32xf32> -> vector<128x32xf32>
    %51 = arith.addf %47, %50 : vector<128x32xf32>
    %c232 = arith.constant 232 : index
    %c0_45 = arith.constant 0 : index
    %52 = vector.load %arg14[%c232, %c0_45] : memref<416x16xf32, #tpu.memory_space<vmem>>, vector<128x16xf32>
    %c112 = arith.constant 112 : index
    %c0_46 = arith.constant 0 : index
    %53 = vector.load %arg4[%c112, %c0_46] : memref<336x32xf32, #tpu.memory_space<vmem>>, vector<16x32xf32>
    %cst_47 = arith.constant dense<0.000000e+00> : vector<128x32xf32>
    %54 = tpu.matmul %52, %53, %cst_47 {dimension_numbers = #tpu.dot_dimension_numbers<[1], [0], [0], [1], [0, 0, 1, 1], [], []>} : vector<128x16xf32>, vector<16x32xf32>, vector<128x32xf32> -> vector<128x32xf32>
    %55 = arith.addf %51, %54 : vector<128x32xf32>
    %c32_48 = arith.constant 32 : index
    %c0_49 = arith.constant 0 : index
    %56 = vector.load %arg14[%c32_48, %c0_49] : memref<416x16xf32, #tpu.memory_space<vmem>>, vector<128x16xf32>
    %c128 = arith.constant 128 : index
    %c0_50 = arith.constant 0 : index
    %57 = vector.load %arg4[%c128, %c0_50] : memref<336x32xf32, #tpu.memory_space<vmem>>, vector<16x32xf32>
    %cst_51 = arith.constant dense<0.000000e+00> : vector<128x32xf32>
    %58 = tpu.matmul %56, %57, %cst_51 {dimension_numbers = #tpu.dot_dimension_numbers<[1], [0], [0], [1], [0, 0, 1, 1], [], []>} : vector<128x16xf32>, vector<16x32xf32>, vector<128x32xf32> -> vector<128x32xf32>
    %59 = arith.addf %55, %58 : vector<128x32xf32>
    %c240 = arith.constant 240 : index
    %c0_52 = arith.constant 0 : index
    %60 = vector.load %arg14[%c240, %c0_52] : memref<416x16xf32, #tpu.memory_space<vmem>>, vector<128x16xf32>
    %c144 = arith.constant 144 : index
    %c0_53 = arith.constant 0 : index
    %61 = vector.load %arg4[%c144, %c0_53] : memref<336x32xf32, #tpu.memory_space<vmem>>, vector<16x32xf32>
    %cst_54 = arith.constant dense<0.000000e+00> : vector<128x32xf32>
    %62 = tpu.matmul %60, %61, %cst_54 {dimension_numbers = #tpu.dot_dimension_numbers<[1], [0], [0], [1], [0, 0, 1, 1], [], []>} : vector<128x16xf32>, vector<16x32xf32>, vector<128x32xf32> -> vector<128x32xf32>
    %63 = arith.addf %59, %62 : vector<128x32xf32>
    %c40_55 = arith.constant 40 : index
    %c0_56 = arith.constant 0 : index
    %64 = vector.load %arg14[%c40_55, %c0_56] : memref<416x16xf32, #tpu.memory_space<vmem>>, vector<128x16xf32>
    %c160 = arith.constant 160 : index
    %c0_57 = arith.constant 0 : index
    %65 = vector.load %arg4[%c160, %c0_57] : memref<336x32xf32, #tpu.memory_space<vmem>>, vector<16x32xf32>
    %cst_58 = arith.constant dense<0.000000e+00> : vector<128x32xf32>
    %66 = tpu.matmul %64, %65, %cst_58 {dimension_numbers = #tpu.dot_dimension_numbers<[1], [0], [0], [1], [0, 0, 1, 1], [], []>} : vector<128x16xf32>, vector<16x32xf32>, vector<128x32xf32> -> vector<128x32xf32>
    %67 = arith.addf %63, %66 : vector<128x32xf32>
    %c248_59 = arith.constant 248 : index
    %c0_60 = arith.constant 0 : index
    %68 = vector.load %arg14[%c248_59, %c0_60] : memref<416x16xf32, #tpu.memory_space<vmem>>, vector<128x16xf32>
    %c176 = arith.constant 176 : index
    %c0_61 = arith.constant 0 : index
    %69 = vector.load %arg4[%c176, %c0_61] : memref<336x32xf32, #tpu.memory_space<vmem>>, vector<16x32xf32>
    %cst_62 = arith.constant dense<0.000000e+00> : vector<128x32xf32>
    %70 = tpu.matmul %68, %69, %cst_62 {dimension_numbers = #tpu.dot_dimension_numbers<[1], [0], [0], [1], [0, 0, 1, 1], [], []>} : vector<128x16xf32>, vector<16x32xf32>, vector<128x32xf32> -> vector<128x32xf32>
    %71 = arith.addf %67, %70 : vector<128x32xf32>
    %c48_63 = arith.constant 48 : index
    %c0_64 = arith.constant 0 : index
    %72 = vector.load %arg14[%c48_63, %c0_64] : memref<416x16xf32, #tpu.memory_space<vmem>>, vector<128x16xf32>
    %c192 = arith.constant 192 : index
    %c0_65 = arith.constant 0 : index
    %73 = vector.load %arg4[%c192, %c0_65] : memref<336x32xf32, #tpu.memory_space<vmem>>, vector<16x32xf32>
    %cst_66 = arith.constant dense<0.000000e+00> : vector<128x32xf32>
    %74 = tpu.matmul %72, %73, %cst_66 {dimension_numbers = #tpu.dot_dimension_numbers<[1], [0], [0], [1], [0, 0, 1, 1], [], []>} : vector<128x16xf32>, vector<16x32xf32>, vector<128x32xf32> -> vector<128x32xf32>
    %75 = arith.addf %71, %74 : vector<128x32xf32>
    %c256 = arith.constant 256 : index
    %c0_67 = arith.constant 0 : index
    %76 = vector.load %arg14[%c256, %c0_67] : memref<416x16xf32, #tpu.memory_space<vmem>>, vector<128x16xf32>
    %c208_68 = arith.constant 208 : index
    %c0_69 = arith.constant 0 : index
    %77 = vector.load %arg4[%c208_68, %c0_69] : memref<336x32xf32, #tpu.memory_space<vmem>>, vector<16x32xf32>
    %cst_70 = arith.constant dense<0.000000e+00> : vector<128x32xf32>
    %78 = tpu.matmul %76, %77, %cst_70 {dimension_numbers = #tpu.dot_dimension_numbers<[1], [0], [0], [1], [0, 0, 1, 1], [], []>} : vector<128x16xf32>, vector<16x32xf32>, vector<128x32xf32> -> vector<128x32xf32>
    %79 = arith.addf %75, %78 : vector<128x32xf32>
    %c56 = arith.constant 56 : index
    %c0_71 = arith.constant 0 : index
    %80 = vector.load %arg14[%c56, %c0_71] : memref<416x16xf32, #tpu.memory_space<vmem>>, vector<128x16xf32>
    %c224_72 = arith.constant 224 : index
    %c0_73 = arith.constant 0 : index
    %81 = vector.load %arg4[%c224_72, %c0_73] : memref<336x32xf32, #tpu.memory_space<vmem>>, vector<16x32xf32>
    %cst_74 = arith.constant dense<0.000000e+00> : vector<128x32xf32>
    %82 = tpu.matmul %80, %81, %cst_74 {dimension_numbers = #tpu.dot_dimension_numbers<[1], [0], [0], [1], [0, 0, 1, 1], [], []>} : vector<128x16xf32>, vector<16x32xf32>, vector<128x32xf32> -> vector<128x32xf32>
    %83 = arith.addf %79, %82 : vector<128x32xf32>
    %c264 = arith.constant 264 : index
    %c0_75 = arith.constant 0 : index
    %84 = vector.load %arg14[%c264, %c0_75] : memref<416x16xf32, #tpu.memory_space<vmem>>, vector<128x16xf32>
    %c240_76 = arith.constant 240 : index
    %c0_77 = arith.constant 0 : index
    %85 = vector.load %arg4[%c240_76, %c0_77] : memref<336x32xf32, #tpu.memory_space<vmem>>, vector<16x32xf32>
    %cst_78 = arith.constant dense<0.000000e+00> : vector<128x32xf32>
    %86 = tpu.matmul %84, %85, %cst_78 {dimension_numbers = #tpu.dot_dimension_numbers<[1], [0], [0], [1], [0, 0, 1, 1], [], []>} : vector<128x16xf32>, vector<16x32xf32>, vector<128x32xf32> -> vector<128x32xf32>
    %87 = arith.addf %83, %86 : vector<128x32xf32>
    %c64_79 = arith.constant 64 : index
    %c0_80 = arith.constant 0 : index
    %88 = vector.load %arg14[%c64_79, %c0_80] : memref<416x16xf32, #tpu.memory_space<vmem>>, vector<128x16xf32>
    %c256_81 = arith.constant 256 : index
    %c0_82 = arith.constant 0 : index
    %89 = vector.load %arg4[%c256_81, %c0_82] : memref<336x32xf32, #tpu.memory_space<vmem>>, vector<16x32xf32>
    %cst_83 = arith.constant dense<0.000000e+00> : vector<128x32xf32>
    %90 = tpu.matmul %88, %89, %cst_83 {dimension_numbers = #tpu.dot_dimension_numbers<[1], [0], [0], [1], [0, 0, 1, 1], [], []>} : vector<128x16xf32>, vector<16x32xf32>, vector<128x32xf32> -> vector<128x32xf32>
    %91 = arith.addf %87, %90 : vector<128x32xf32>
    %c272 = arith.constant 272 : index
    %c0_84 = arith.constant 0 : index
    %92 = vector.load %arg14[%c272, %c0_84] : memref<416x16xf32, #tpu.memory_space<vmem>>, vector<128x16xf32>
    %c272_85 = arith.constant 272 : index
    %c0_86 = arith.constant 0 : index
    %93 = vector.load %arg4[%c272_85, %c0_86] : memref<336x32xf32, #tpu.memory_space<vmem>>, vector<16x32xf32>
    %cst_87 = arith.constant dense<0.000000e+00> : vector<128x32xf32>
    %94 = tpu.matmul %92, %93, %cst_87 {dimension_numbers = #tpu.dot_dimension_numbers<[1], [0], [0], [1], [0, 0, 1, 1], [], []>} : vector<128x16xf32>, vector<16x32xf32>, vector<128x32xf32> -> vector<128x32xf32>
    %95 = arith.addf %91, %94 : vector<128x32xf32>
    %c72 = arith.constant 72 : index
    %c0_88 = arith.constant 0 : index
    %96 = vector.load %arg14[%c72, %c0_88] : memref<416x16xf32, #tpu.memory_space<vmem>>, vector<128x16xf32>
    %c288 = arith.constant 288 : index
    %c0_89 = arith.constant 0 : index
    %97 = vector.load %arg4[%c288, %c0_89] : memref<336x32xf32, #tpu.memory_space<vmem>>, vector<16x32xf32>
    %cst_90 = arith.constant dense<0.000000e+00> : vector<128x32xf32>
    %98 = tpu.matmul %96, %97, %cst_90 {dimension_numbers = #tpu.dot_dimension_numbers<[1], [0], [0], [1], [0, 0, 1, 1], [], []>} : vector<128x16xf32>, vector<16x32xf32>, vector<128x32xf32> -> vector<128x32xf32>
    %99 = arith.addf %95, %98 : vector<128x32xf32>
    %c280 = arith.constant 280 : index
    %c0_91 = arith.constant 0 : index
    %100 = vector.load %arg14[%c280, %c0_91] : memref<416x16xf32, #tpu.memory_space<vmem>>, vector<128x16xf32>
    %c304 = arith.constant 304 : index
    %c0_92 = arith.constant 0 : index
    %101 = vector.load %arg4[%c304, %c0_92] : memref<336x32xf32, #tpu.memory_space<vmem>>, vector<16x32xf32>
    %cst_93 = arith.constant dense<0.000000e+00> : vector<128x32xf32>
    %102 = tpu.matmul %100, %101, %cst_93 {dimension_numbers = #tpu.dot_dimension_numbers<[1], [0], [0], [1], [0, 0, 1, 1], [], []>} : vector<128x16xf32>, vector<16x32xf32>, vector<128x32xf32> -> vector<128x32xf32>
    %103 = arith.addf %99, %102 : vector<128x32xf32>
    %c80_94 = arith.constant 80 : index
    %c0_95 = arith.constant 0 : index
    %104 = vector.load %arg14[%c80_94, %c0_95] : memref<416x16xf32, #tpu.memory_space<vmem>>, vector<128x16xf32>
    %c320 = arith.constant 320 : index
    %c0_96 = arith.constant 0 : index
    %105 = vector.load %arg4[%c320, %c0_96] : memref<336x32xf32, #tpu.memory_space<vmem>>, vector<16x32xf32>
    %cst_97 = arith.constant dense<0.000000e+00> : vector<128x32xf32>
    %106 = tpu.matmul %104, %105, %cst_97 {dimension_numbers = #tpu.dot_dimension_numbers<[1], [0], [0], [1], [0, 0, 1, 1], [], []>} : vector<128x16xf32>, vector<16x32xf32>, vector<128x32xf32> -> vector<128x32xf32>
    %107 = arith.addf %103, %106 : vector<128x32xf32>
    %c0_98 = arith.constant 0 : index
    %c0_99 = arith.constant 0 : index
    %108 = vector.load %arg5[%c0_98, %c0_99] : memref<1x32xf32, #tpu.memory_space<vmem>>, vector<1x32xf32>
    %109 = vector.broadcast %108 : vector<1x32xf32> to vector<128x32xf32>
    %110 = arith.mulf %107, %109 : vector<128x32xf32>
    %c0_100 = arith.constant 0 : index
    %c0_101 = arith.constant 0 : index
    %111 = vector.load %arg6[%c0_100, %c0_101] : memref<1x32xf32, #tpu.memory_space<vmem>>, vector<1x32xf32>
    %112 = vector.broadcast %111 : vector<1x32xf32> to vector<128x32xf32>
    %113 = arith.addf %110, %112 : vector<128x32xf32>
    %cst_102 = arith.constant 0.000000e+00 : f32
    %114 = vector.broadcast %cst_102 : f32 to vector<128x32xf32>
    %115 = arith.maximumf %113, %114 : vector<128x32xf32>
    %cst_103 = arith.constant 0.000000e+00 : f32
    %116 = vector.broadcast %cst_103 : f32 to vector<8x64xf32>
    %117 = vector.extract_strided_slice %115 {offsets = [0, 0], sizes = [8, 32], strides = [1, 1]} : vector<128x32xf32> to vector<8x32xf32>
    %c0_104 = arith.constant 0 : index
    %c0_105 = arith.constant 0 : index
    %118 = vector.load %arg7[%c0_104, %c0_105] : memref<512x64xf32, #tpu.memory_space<vmem>>, vector<32x64xf32>
    %cst_106 = arith.constant dense<0.000000e+00> : vector<8x64xf32>
    %119 = tpu.matmul %117, %118, %cst_106 {dimension_numbers = #tpu.dot_dimension_numbers<[1], [0], [0], [1], [0, 0, 1, 1], [], []>} : vector<8x32xf32>, vector<32x64xf32>, vector<8x64xf32> -> vector<8x64xf32>
    %120 = arith.addf %116, %119 : vector<8x64xf32>
    %121 = vector.extract_strided_slice %115 {offsets = [8, 0], sizes = [8, 32], strides = [1, 1]} : vector<128x32xf32> to vector<8x32xf32>
    %c32_107 = arith.constant 32 : index
    %c0_108 = arith.constant 0 : index
    %122 = vector.load %arg7[%c32_107, %c0_108] : memref<512x64xf32, #tpu.memory_space<vmem>>, vector<32x64xf32>
    %cst_109 = arith.constant dense<0.000000e+00> : vector<8x64xf32>
    %123 = tpu.matmul %121, %122, %cst_109 {dimension_numbers = #tpu.dot_dimension_numbers<[1], [0], [0], [1], [0, 0, 1, 1], [], []>} : vector<8x32xf32>, vector<32x64xf32>, vector<8x64xf32> -> vector<8x64xf32>
    %124 = arith.addf %120, %123 : vector<8x64xf32>
    %125 = vector.extract_strided_slice %115 {offsets = [16, 0], sizes = [8, 32], strides = [1, 1]} : vector<128x32xf32> to vector<8x32xf32>
    %c64_110 = arith.constant 64 : index
    %c0_111 = arith.constant 0 : index
    %126 = vector.load %arg7[%c64_110, %c0_111] : memref<512x64xf32, #tpu.memory_space<vmem>>, vector<32x64xf32>
    %cst_112 = arith.constant dense<0.000000e+00> : vector<8x64xf32>
    %127 = tpu.matmul %125, %126, %cst_112 {dimension_numbers = #tpu.dot_dimension_numbers<[1], [0], [0], [1], [0, 0, 1, 1], [], []>} : vector<8x32xf32>, vector<32x64xf32>, vector<8x64xf32> -> vector<8x64xf32>
    %128 = arith.addf %124, %127 : vector<8x64xf32>
    %129 = vector.extract_strided_slice %115 {offsets = [24, 0], sizes = [8, 32], strides = [1, 1]} : vector<128x32xf32> to vector<8x32xf32>
    %c96_113 = arith.constant 96 : index
    %c0_114 = arith.constant 0 : index
    %130 = vector.load %arg7[%c96_113, %c0_114] : memref<512x64xf32, #tpu.memory_space<vmem>>, vector<32x64xf32>
    %cst_115 = arith.constant dense<0.000000e+00> : vector<8x64xf32>
    %131 = tpu.matmul %129, %130, %cst_115 {dimension_numbers = #tpu.dot_dimension_numbers<[1], [0], [0], [1], [0, 0, 1, 1], [], []>} : vector<8x32xf32>, vector<32x64xf32>, vector<8x64xf32> -> vector<8x64xf32>
    %132 = arith.addf %128, %131 : vector<8x64xf32>
    %133 = vector.extract_strided_slice %115 {offsets = [32, 0], sizes = [8, 32], strides = [1, 1]} : vector<128x32xf32> to vector<8x32xf32>
    %c128_116 = arith.constant 128 : index
    %c0_117 = arith.constant 0 : index
    %134 = vector.load %arg7[%c128_116, %c0_117] : memref<512x64xf32, #tpu.memory_space<vmem>>, vector<32x64xf32>
    %cst_118 = arith.constant dense<0.000000e+00> : vector<8x64xf32>
    %135 = tpu.matmul %133, %134, %cst_118 {dimension_numbers = #tpu.dot_dimension_numbers<[1], [0], [0], [1], [0, 0, 1, 1], [], []>} : vector<8x32xf32>, vector<32x64xf32>, vector<8x64xf32> -> vector<8x64xf32>
    %136 = arith.addf %132, %135 : vector<8x64xf32>
    %137 = vector.extract_strided_slice %115 {offsets = [40, 0], sizes = [8, 32], strides = [1, 1]} : vector<128x32xf32> to vector<8x32xf32>
    %c160_119 = arith.constant 160 : index
    %c0_120 = arith.constant 0 : index
    %138 = vector.load %arg7[%c160_119, %c0_120] : memref<512x64xf32, #tpu.memory_space<vmem>>, vector<32x64xf32>
    %cst_121 = arith.constant dense<0.000000e+00> : vector<8x64xf32>
    %139 = tpu.matmul %137, %138, %cst_121 {dimension_numbers = #tpu.dot_dimension_numbers<[1], [0], [0], [1], [0, 0, 1, 1], [], []>} : vector<8x32xf32>, vector<32x64xf32>, vector<8x64xf32> -> vector<8x64xf32>
    %140 = arith.addf %136, %139 : vector<8x64xf32>
    %141 = vector.extract_strided_slice %115 {offsets = [48, 0], sizes = [8, 32], strides = [1, 1]} : vector<128x32xf32> to vector<8x32xf32>
    %c192_122 = arith.constant 192 : index
    %c0_123 = arith.constant 0 : index
    %142 = vector.load %arg7[%c192_122, %c0_123] : memref<512x64xf32, #tpu.memory_space<vmem>>, vector<32x64xf32>
    %cst_124 = arith.constant dense<0.000000e+00> : vector<8x64xf32>
    %143 = tpu.matmul %141, %142, %cst_124 {dimension_numbers = #tpu.dot_dimension_numbers<[1], [0], [0], [1], [0, 0, 1, 1], [], []>} : vector<8x32xf32>, vector<32x64xf32>, vector<8x64xf32> -> vector<8x64xf32>
    %144 = arith.addf %140, %143 : vector<8x64xf32>
    %145 = vector.extract_strided_slice %115 {offsets = [56, 0], sizes = [8, 32], strides = [1, 1]} : vector<128x32xf32> to vector<8x32xf32>
    %c224_125 = arith.constant 224 : index
    %c0_126 = arith.constant 0 : index
    %146 = vector.load %arg7[%c224_125, %c0_126] : memref<512x64xf32, #tpu.memory_space<vmem>>, vector<32x64xf32>
    %cst_127 = arith.constant dense<0.000000e+00> : vector<8x64xf32>
    %147 = tpu.matmul %145, %146, %cst_127 {dimension_numbers = #tpu.dot_dimension_numbers<[1], [0], [0], [1], [0, 0, 1, 1], [], []>} : vector<8x32xf32>, vector<32x64xf32>, vector<8x64xf32> -> vector<8x64xf32>
    %148 = arith.addf %144, %147 : vector<8x64xf32>
    %149 = vector.extract_strided_slice %115 {offsets = [64, 0], sizes = [8, 32], strides = [1, 1]} : vector<128x32xf32> to vector<8x32xf32>
    %c256_128 = arith.constant 256 : index
    %c0_129 = arith.constant 0 : index
    %150 = vector.load %arg7[%c256_128, %c0_129] : memref<512x64xf32, #tpu.memory_space<vmem>>, vector<32x64xf32>
    %cst_130 = arith.constant dense<0.000000e+00> : vector<8x64xf32>
    %151 = tpu.matmul %149, %150, %cst_130 {dimension_numbers = #tpu.dot_dimension_numbers<[1], [0], [0], [1], [0, 0, 1, 1], [], []>} : vector<8x32xf32>, vector<32x64xf32>, vector<8x64xf32> -> vector<8x64xf32>
    %152 = arith.addf %148, %151 : vector<8x64xf32>
    %153 = vector.extract_strided_slice %115 {offsets = [72, 0], sizes = [8, 32], strides = [1, 1]} : vector<128x32xf32> to vector<8x32xf32>
    %c288_131 = arith.constant 288 : index
    %c0_132 = arith.constant 0 : index
    %154 = vector.load %arg7[%c288_131, %c0_132] : memref<512x64xf32, #tpu.memory_space<vmem>>, vector<32x64xf32>
    %cst_133 = arith.constant dense<0.000000e+00> : vector<8x64xf32>
    %155 = tpu.matmul %153, %154, %cst_133 {dimension_numbers = #tpu.dot_dimension_numbers<[1], [0], [0], [1], [0, 0, 1, 1], [], []>} : vector<8x32xf32>, vector<32x64xf32>, vector<8x64xf32> -> vector<8x64xf32>
    %156 = arith.addf %152, %155 : vector<8x64xf32>
    %157 = vector.extract_strided_slice %115 {offsets = [80, 0], sizes = [8, 32], strides = [1, 1]} : vector<128x32xf32> to vector<8x32xf32>
    %c320_134 = arith.constant 320 : index
    %c0_135 = arith.constant 0 : index
    %158 = vector.load %arg7[%c320_134, %c0_135] : memref<512x64xf32, #tpu.memory_space<vmem>>, vector<32x64xf32>
    %cst_136 = arith.constant dense<0.000000e+00> : vector<8x64xf32>
    %159 = tpu.matmul %157, %158, %cst_136 {dimension_numbers = #tpu.dot_dimension_numbers<[1], [0], [0], [1], [0, 0, 1, 1], [], []>} : vector<8x32xf32>, vector<32x64xf32>, vector<8x64xf32> -> vector<8x64xf32>
    %160 = arith.addf %156, %159 : vector<8x64xf32>
    %161 = vector.extract_strided_slice %115 {offsets = [88, 0], sizes = [8, 32], strides = [1, 1]} : vector<128x32xf32> to vector<8x32xf32>
    %c352 = arith.constant 352 : index
    %c0_137 = arith.constant 0 : index
    %162 = vector.load %arg7[%c352, %c0_137] : memref<512x64xf32, #tpu.memory_space<vmem>>, vector<32x64xf32>
    %cst_138 = arith.constant dense<0.000000e+00> : vector<8x64xf32>
    %163 = tpu.matmul %161, %162, %cst_138 {dimension_numbers = #tpu.dot_dimension_numbers<[1], [0], [0], [1], [0, 0, 1, 1], [], []>} : vector<8x32xf32>, vector<32x64xf32>, vector<8x64xf32> -> vector<8x64xf32>
    %164 = arith.addf %160, %163 : vector<8x64xf32>
    %165 = vector.extract_strided_slice %115 {offsets = [96, 0], sizes = [8, 32], strides = [1, 1]} : vector<128x32xf32> to vector<8x32xf32>
    %c384 = arith.constant 384 : index
    %c0_139 = arith.constant 0 : index
    %166 = vector.load %arg7[%c384, %c0_139] : memref<512x64xf32, #tpu.memory_space<vmem>>, vector<32x64xf32>
    %cst_140 = arith.constant dense<0.000000e+00> : vector<8x64xf32>
    %167 = tpu.matmul %165, %166, %cst_140 {dimension_numbers = #tpu.dot_dimension_numbers<[1], [0], [0], [1], [0, 0, 1, 1], [], []>} : vector<8x32xf32>, vector<32x64xf32>, vector<8x64xf32> -> vector<8x64xf32>
    %168 = arith.addf %164, %167 : vector<8x64xf32>
    %169 = vector.extract_strided_slice %115 {offsets = [104, 0], sizes = [8, 32], strides = [1, 1]} : vector<128x32xf32> to vector<8x32xf32>
    %c416 = arith.constant 416 : index
    %c0_141 = arith.constant 0 : index
    %170 = vector.load %arg7[%c416, %c0_141] : memref<512x64xf32, #tpu.memory_space<vmem>>, vector<32x64xf32>
    %cst_142 = arith.constant dense<0.000000e+00> : vector<8x64xf32>
    %171 = tpu.matmul %169, %170, %cst_142 {dimension_numbers = #tpu.dot_dimension_numbers<[1], [0], [0], [1], [0, 0, 1, 1], [], []>} : vector<8x32xf32>, vector<32x64xf32>, vector<8x64xf32> -> vector<8x64xf32>
    %172 = arith.addf %168, %171 : vector<8x64xf32>
    %173 = vector.extract_strided_slice %115 {offsets = [112, 0], sizes = [8, 32], strides = [1, 1]} : vector<128x32xf32> to vector<8x32xf32>
    %c448 = arith.constant 448 : index
    %c0_143 = arith.constant 0 : index
    %174 = vector.load %arg7[%c448, %c0_143] : memref<512x64xf32, #tpu.memory_space<vmem>>, vector<32x64xf32>
    %cst_144 = arith.constant dense<0.000000e+00> : vector<8x64xf32>
    %175 = tpu.matmul %173, %174, %cst_144 {dimension_numbers = #tpu.dot_dimension_numbers<[1], [0], [0], [1], [0, 0, 1, 1], [], []>} : vector<8x32xf32>, vector<32x64xf32>, vector<8x64xf32> -> vector<8x64xf32>
    %176 = arith.addf %172, %175 : vector<8x64xf32>
    %177 = vector.extract_strided_slice %115 {offsets = [120, 0], sizes = [8, 32], strides = [1, 1]} : vector<128x32xf32> to vector<8x32xf32>
    %c480 = arith.constant 480 : index
    %c0_145 = arith.constant 0 : index
    %178 = vector.load %arg7[%c480, %c0_145] : memref<512x64xf32, #tpu.memory_space<vmem>>, vector<32x64xf32>
    %cst_146 = arith.constant dense<0.000000e+00> : vector<8x64xf32>
    %179 = tpu.matmul %177, %178, %cst_146 {dimension_numbers = #tpu.dot_dimension_numbers<[1], [0], [0], [1], [0, 0, 1, 1], [], []>} : vector<8x32xf32>, vector<32x64xf32>, vector<8x64xf32> -> vector<8x64xf32>
    %180 = arith.addf %176, %179 : vector<8x64xf32>
    %c0_147 = arith.constant 0 : index
    %c0_148 = arith.constant 0 : index
    %181 = vector.load %arg8[%c0_147, %c0_148] : memref<1x64xf32, #tpu.memory_space<vmem>>, vector<1x64xf32>
    %182 = vector.broadcast %181 : vector<1x64xf32> to vector<8x64xf32>
    %183 = arith.addf %180, %182 : vector<8x64xf32>
    %cst_149 = arith.constant 0.000000e+00 : f32
    %184 = vector.broadcast %cst_149 : f32 to vector<8x64xf32>
    %185 = arith.maximumf %183, %184 : vector<8x64xf32>
    %c0_150 = arith.constant 0 : index
    %c0_151 = arith.constant 0 : index
    %186 = vector.load %arg9[%c0_150, %c0_151] : memref<64x32xf32, #tpu.memory_space<vmem>>, vector<64x32xf32>
    %cst_152 = arith.constant dense<0.000000e+00> : vector<8x32xf32>
    %187 = tpu.matmul %185, %186, %cst_152 {dimension_numbers = #tpu.dot_dimension_numbers<[1], [0], [0], [1], [0, 0, 1, 1], [], []>} : vector<8x64xf32>, vector<64x32xf32>, vector<8x32xf32> -> vector<8x32xf32>
    %c0_153 = arith.constant 0 : index
    %c0_154 = arith.constant 0 : index
    %188 = vector.load %arg10[%c0_153, %c0_154] : memref<1x32xf32, #tpu.memory_space<vmem>>, vector<1x32xf32>
    %189 = vector.broadcast %188 : vector<1x32xf32> to vector<8x32xf32>
    %190 = arith.addf %187, %189 : vector<8x32xf32>
    %cst_155 = arith.constant 0.000000e+00 : f32
    %191 = vector.broadcast %cst_155 : f32 to vector<8x32xf32>
    %192 = arith.maximumf %190, %191 : vector<8x32xf32>
    %c0_156 = arith.constant 0 : index
    %c0_157 = arith.constant 0 : index
    %193 = vector.load %arg11[%c0_156, %c0_157] : memref<32x128xf32, #tpu.memory_space<vmem>>, vector<32x128xf32>
    %cst_158 = arith.constant dense<0.000000e+00> : vector<8x128xf32>
    %194 = tpu.matmul %192, %193, %cst_158 {dimension_numbers = #tpu.dot_dimension_numbers<[1], [0], [0], [1], [0, 0, 1, 1], [], []>} : vector<8x32xf32>, vector<32x128xf32>, vector<8x128xf32> -> vector<8x128xf32>
    %c0_159 = arith.constant 0 : index
    %c0_160 = arith.constant 0 : index
    %195 = vector.load %arg12[%c0_159, %c0_160] : memref<1x128xf32, #tpu.memory_space<vmem>>, vector<1x128xf32>
    %196 = vector.broadcast %195 : vector<1x128xf32> to vector<8x128xf32>
    %197 = arith.addf %194, %196 : vector<8x128xf32>
    %c0_161 = arith.constant 0 : index
    %c0_162 = arith.constant 0 : index
    %198 = vector.load %arg13[%c0_161, %c0_162] : memref<8x128xf32, #tpu.memory_space<vmem>>, vector<8x128xf32>
    tpu.vector_store %arg13[%c0_161, %c0_162], %197 {strides = array<i32>} : memref<8x128xf32, #tpu.memory_space<vmem>>, vector<8x128xf32>,
    return
  }
}

</mosaic_0001>

<bundles_post_ra>
// kernel: conv1dmlp_forward.1
= control target key start
LH: loop header
LB: loop body
LE: loop exit
PB: predicated region body
PF: predicated region fallthrough
CT: control target
= control target key end

     0   :  { %vm87_vm0 = vcmask 670720   ;;  %vm184_vm1 = vcmask 1041408   ;;  %vm523_vm2 = vcmask 130048   ;;  %v9124_v48 = vmov 0.0   ;;  %s10831_s1 = inlined_call_operand.vmem [shape: f32[82,16], index: 1, kind: input, shape index: {}]   ;;  %s10832_s0 = inlined_call_operand.vmem [shape: f32[256,82], index: 0, kind: input, shape index: {}]   ;;  %s10833_s4 = inlined_call_operand.vmem [shape: f32[336,32], index: 4, kind: input, shape index: {}]   ;;  %s10834_s2 = inlined_call_operand.vmem [shape: f32[1,16], index: 2, kind: input, shape index: {}]   ;;  %s10835_s3 = inlined_call_operand.vmem [shape: f32[1,16], index: 3, kind: input, shape index: {}]   ;;  %s10836_s7 = inlined_call_operand.vmem [shape: f32[512,64], index: 7, kind: input, shape index: {}]   ;;  %s10837_s5 = inlined_call_operand.vmem [shape: f32[1,32], index: 5, kind: input, shape index: {}]   ;;  %s10838_s6 = inlined_call_operand.vmem [shape: f32[1,32], index: 6, kind: input, shape index: {}]   ;;  %s10839_s9 = inlined_call_operand.vmem [shape: f32[64,32], index: 9, kind: input, shape index: {}]   ;;  %s10840_s8 = inlined_call_operand.vmem [shape: f32[1,64], index: 8, kind: input, shape index: {}]   ;;  %s10841_s11 = inlined_call_operand.vmem [shape: f32[32,128], index: 11, kind: input, shape index: {}]   ;;  %s10842_s10 = inlined_call_operand.vmem [shape: f32[1,32], index: 10, kind: input, shape index: {}]   ;;  %s10843_s12 = inlined_call_operand.vmem [shape: f32[1,128], index: 12, kind: input, shape index: {}]   ;;  %s10844_s13 = inlined_call_operand.vmem [shape: f32[8,128], index: 13, kind: output, shape index: {}]  }
   0x1   :  { %v76_v0 = vld [vmem:[%s10831_s1] sm:$0xff]  ;;  %v77_v1 = vld [vmem:[%s10831_s1 + $0x8] sm:$0xff]  ;;  %v78_v2 = vld [vmem:[%s10831_s1 + $0x10] sm:$0xff]  ;;  %550 = vst.msk [vmem:[#allocation2 + $0xd0] sm:$0xff] %vm523_vm2, %v9124_v48  ;;  %vm9126_vm3 = vmmov 0   ;;  %vm5381_vm4 = vcmask 261120  }
   0x2   :  { %v8581_v3 = vpack.c.bf16 %v77_v1, %v76_v0  ;;  %v79_v4 = vld [vmem:[%s10831_s1 + $0x18] sm:$0xff]  ;;  %v80_v6 = vld [vmem:[%s10831_s1 + $0x20] sm:$0xff]  ;;  %v81_v7 = vld [vmem:[%s10831_s1 + $0x28] sm:$0xff]  ;;  %524 = vst.msk [vmem:[#allocation2] sm:$0xff] %vm523_vm2, %v9124_v48  ;;  %vm6644_vm5 = vcmask 523264  }
   0x3   :  { %v8585_v5 = vpack.c.bf16 %v79_v4, %v78_v2  ;;  %v44_v8 = vld [vmem:[%s10832_s0] sm:$0xff]  ;;  %v8589_v9 = vpack.c.bf16 %v81_v7, %v80_v6  ;;  %v82_v10 = vld [vmem:[%s10831_s1 + $0x30] sm:$0xff]  ;;  %v83_v11 = vld [vmem:[%s10831_s1 + $0x38] sm:$0xff]  ;;  %525 = vst.msk [vmem:[#allocation2 + $0x8] sm:$0xff] %vm523_vm2, %v9124_v48 }
   0x4   :  { %8582 = vmatprep.subr.bf16.mxu0 %v8581_v3  ;;  %7739 = vmatprep.mubr.msk.f32.mxu0 %vm87_vm0, %v44_v8  ;;  %v8593_v12 = vpack.c.bf16 %v83_v11, %v82_v10  ;;  %v84_v13 = vld [vmem:[%s10831_s1 + $0x40] sm:$0xff]  ;;  %v85_v14 = vld [vmem:[%s10831_s1 + $0x48] sm:$0xff]  ;;  %v86_v16 = vld [vmem:[%s10831_s1 + $0x50] sm:$0x3]  ;;  %526 = vst.msk [vmem:[#allocation2 + $0x10] sm:$0xff] %vm523_vm2, %v9124_v48 }
   0x5   :  { %8584 = vmatpush3.bf16.msra.mxu0 %v8581_v3  ;;  %v8597_v15 = vpack.c.bf16 %v85_v14, %v84_v13  ;;  %v45_v17 = vld [vmem:[%s10832_s0 + $0x8] sm:$0xff]  ;;  %v46_v18 = vld [vmem:[%s10832_s0 + $0x10] sm:$0xff]  ;;  %v47_v19 = vld [vmem:[%s10832_s0 + $0x18] sm:$0xff]  ;;  %527 = vst.msk [vmem:[#allocation2 + $0x18] sm:$0xff] %vm523_vm2, %v9124_v48 }
   0x6   :  { %8586 = vmatprep.subr.bf16.mxu0 %v8585_v5  ;;  %v48_v20 = vld [vmem:[%s10832_s0 + $0x20] sm:$0xff]  ;;  %v49_v21 = vld [vmem:[%s10832_s0 + $0x28] sm:$0xff]  ;;  %v50_v22 = vld [vmem:[%s10832_s0 + $0x30] sm:$0xff]  ;;  %528 = vst.msk [vmem:[#allocation2 + $0x20] sm:$0xff] %vm523_vm2, %v9124_v48 }
   0x7   :  { %v51_v23 = vld [vmem:[%s10832_s0 + $0x38] sm:$0xff]  ;;  %v52_v24 = vld [vmem:[%s10832_s0 + $0x40] sm:$0xff]  ;;  %v53_v25 = vld [vmem:[%s10832_s0 + $0x48] sm:$0xff]  ;;  %545 = vst.msk [vmem:[#allocation2 + $0xa8] sm:$0xff] %vm523_vm2, %v9124_v48 }
   0x8   :  { %v54_v26 = vld [vmem:[%s10832_s0 + $0x50] sm:$0xff]  ;;  %v55_v27 = vld [vmem:[%s10832_s0 + $0x58] sm:$0xff]  ;;  %v56_v28 = vld [vmem:[%s10832_s0 + $0x60] sm:$0xff]  ;;  %546 = vst.msk [vmem:[#allocation2 + $0xb0] sm:$0xff] %vm523_vm2, %v9124_v48 }
   0x9   :  { %8588 = vmatpush3.bf16.msra.mxu0 %v8585_v5  ;;  %v57_v29 = vld [vmem:[%s10832_s0 + $0x68] sm:$0xff]  ;;  %v58_v30 = vld [vmem:[%s10832_s0 + $0x70] sm:$0xff]  ;;  %v59_v31 = vld [vmem:[%s10832_s0 + $0x78] sm:$0xff]  ;;  %547 = vst.msk [vmem:[#allocation2 + $0xb8] sm:$0xff] %vm523_vm2, %v9124_v48 }
   0xa   :  { %8590 = vmatprep.subr.bf16.mxu0 %v8589_v9  ;;  %v60_v32 = vld [vmem:[%s10832_s0 + $0x80] sm:$0xff]  ;;  %v61_v33 = vld [vmem:[%s10832_s0 + $0x88] sm:$0xff]  ;;  %v62_v34 = vld [vmem:[%s10832_s0 + $0x90] sm:$0xff]  ;;  %548 = vst.msk [vmem:[#allocation2 + $0xc0] sm:$0xff] %vm523_vm2, %v9124_v48 }
   0xb   :  { %v63_v35 = vld [vmem:[%s10832_s0 + $0x98] sm:$0xff]  ;;  %v64_v36 = vld [vmem:[%s10832_s0 + $0xa0] sm:$0xff]  ;;  %v65_v37 = vld [vmem:[%s10832_s0 + $0xa8] sm:$0xff]  ;;  %549 = vst.msk [vmem:[#allocation2 + $0xc8] sm:$0xff] %vm523_vm2, %v9124_v48 }
   0xc   :  { %v66_v38 = vld [vmem:[%s10832_s0 + $0xb0] sm:$0xff]  ;;  %v67_v39 = vld [vmem:[%s10832_s0 + $0xb8] sm:$0xff]  ;;  %v68_v40 = vld [vmem:[%s10832_s0 + $0xc0] sm:$0xff]  ;;  %551 = vst.msk [vmem:[#allocation2 + $0xd8] sm:$0xff] %vm523_vm2, %v9124_v48 }
   0xd   :  { %8592 = vmatpush3.bf16.msra.mxu0 %v8589_v9  ;;  %v69_v41 = vld [vmem:[%s10832_s0 + $0xc8] sm:$0xff]  ;;  %v70_v42 = vld [vmem:[%s10832_s0 + $0xd0] sm:$0xff]  ;;  %v71_v43 = vld [vmem:[%s10832_s0 + $0xd8] sm:$0xff]  ;;  %552 = vst.msk [vmem:[#allocation2 + $0xe0] sm:$0xff] %vm523_vm2, %v9124_v48 }
   0xe   :  { %8594 = vmatprep.subr.bf16.mxu0 %v8593_v12  ;;  %v72_v44 = vld [vmem:[%s10832_s0 + $0xe0] sm:$0xff]  ;;  %v73_v45 = vld [vmem:[%s10832_s0 + $0xe8] sm:$0xff]  ;;  %v74_v46 = vld [vmem:[%s10832_s0 + $0xf0] sm:$0xff]  ;;  %553 = vst.msk [vmem:[#allocation2 + $0xe8] sm:$0xff] %vm523_vm2, %v9124_v48 }
   0xf   :  { %v75_v47 = vld [vmem:[%s10832_s0 + $0xf8] sm:$0xff]  ;;  %554 = vst.msk [vmem:[#allocation2 + $0xf0] sm:$0xff] %vm523_vm2, %v9124_v48  ;;  %571 = vst.msk [vmem:[#allocation2 + $0x178] sm:$0xff] %vm523_vm2, %v9124_v48  ;;  %v610_v49 = vld [vmem:[%s10833_s4 + $0x10] sm:$0xff] }
  0x10   :  { %572 = vst.msk [vmem:[#allocation2 + $0x180] sm:$0xff] %vm523_vm2, %v9124_v48  ;;  %573 = vst.msk [vmem:[#allocation2 + $0x188] sm:$0xff] %vm523_vm2, %v9124_v48  ;;  %v611_v50 = vld [vmem:[%s10833_s4 + $0x18] sm:$0xff]  ;;  %v1922_v52 = vld [vmem:[%s10833_s4 + $0x60] sm:$0xff] }
  0x11   :  { %8596 = vmatpush3.bf16.msra.mxu0 %v8593_v12  ;;  %574 = vst.msk [vmem:[#allocation2 + $0x190] sm:$0xff] %vm523_vm2, %v9124_v48  ;;  %v8601_v51 = vpack.c.bf16 %v611_v50, %v610_v49  ;;  %v1923_v53 = vld [vmem:[%s10833_s4 + $0x68] sm:$0xff]  ;;  %v594_v55 = vld [vmem:[#allocation2 + $0xd0] sm:$0xff]  ;;  %v2150_v57 = vld [vmem:[%s10833_s4 + $0x78] sm:$0xff] }
  0x12   :  { %8598 = vmatprep.subr.bf16.mxu0 %v8597_v15  ;;  %v9408_v54 = vpack.c.bf16 %v1923_v53, %v1922_v52  ;;  %v2149_v56 = vld [vmem:[%s10833_s4 + $0x70] sm:$0xff]  ;;  %v592_v63 = vld [vmem:[%s10833_s4] sm:$0xff]  ;;  %v593_v0 = vld [vmem:[%s10833_s4 + $0x8] sm:$0xff] }
  0x13   :  { %v9419_v58 = vld [vmem:[#allocation2 + $0xd8] sm:$0xff]  ;;  %v9421_v59 = vpack.c.bf16 %v2150_v57, %v2149_v56  ;;  %v8605_v1 = vpack.c.bf16 %v593_v0, %v592_v63  ;;  %v1014_v2 = vld [vmem:[%s10833_s4 + $0x20] sm:$0xff]  ;;  %v1015_v3 = vld [vmem:[%s10833_s4 + $0x28] sm:$0xff] }
  0x14   :  { %8799 = vmatprep.subr.bf16.mxu1 %v9408_v54  ;;  %v9426_v60 = vld [vmem:[#allocation2 + $0xe0] sm:$0xff]  ;;  %v9450_v4 = vpack.c.bf16 %v1015_v3, %v1014_v2 }
  0x15   :  { %8600 = vmatpush3.bf16.msra.mxu0 %v8597_v15  ;;  %8800 = vmatpush3.bf16.msra.mxu1 %v9408_v54  ;;  %v9430_v61 = vld [vmem:[#allocation2 + $0xe8] sm:$0xff]  ;;  %v9456_v5 = vld [vmem:[%s10834_s2] ss:$0 sm:$0xff] }
  0x16   :  { %7737 = vmatprep.subr.msk.mxu0 %vm184_vm1, %v86_v16  ;;  %8630 = vmatprep.subr.bf16.mxu1 %v9421_v59  ;;  %v9434_v62 = vld [vmem:[#allocation2 + $0xf0] sm:$0xff]  ;;  %v9461_v7 = vld [vmem:[%s10835_s3] ss:$0 sm:$0xff] }
  0x19   :  { %7738 = vmatpush3.msk.msra.mxu0 %vm184_vm1, %v86_v16 }
  0x1a   :  { %7740 = vmatmul.mubr.msk.f32.vlgmr.msra.gmra.mrb[0].mxu0 %vm87_vm0, %v45_v17  ;;  %8602 = vmatprep.subr.bf16.mxu0 %v8601_v51 }
  0x1b   :  { %7742 = vmatprep.mubr.msk.f32.mxu0 %vm87_vm0, %v46_v18  ;;  %8604 = vmatpush3.bf16.msra.mxu0 %v8601_v51 }
  0x1c   :  { %8606 = vmatprep.subr.bf16.mxu0 %v8605_v1 }
  0x1e   :  { %7743 = vmatmul.mubr.msk.f32.gmra.mrb[2].mxu0 %vm87_vm0, %v47_v19 }
  0x1f   :  { %7745 = vmatprep.mubr.msk.f32.mxu0 %vm87_vm0, %v48_v20 }
  0x22   :  { %7746 = vmatmul.mubr.msk.f32.gmra.mrb[4].mxu0 %vm87_vm0, %v49_v21 }
  0x23   :  { %7748 = vmatprep.mubr.msk.f32.mxu0 %vm87_vm0, %v50_v22 }
  0x26   :  { %7749 = vmatmul.mubr.msk.f32.gmra.mrb[6].mxu0 %vm87_vm0, %v51_v23 }
  0x27   :  { %7751 = vmatprep.mubr.msk.f32.mxu0 %vm87_vm0, %v52_v24 }
  0x2a   :  { %7752 = vmatmul.mubr.msk.f32.gmra.mrb[8].mxu0 %vm87_vm0, %v53_v25 }
  0x2b   :  { %7754 = vmatprep.mubr.msk.f32.mxu0 %vm87_vm0, %v54_v26 }
  0x2e   :  { %7755 = vmatmul.mubr.msk.f32.gmra.mrb[10].mxu0 %vm87_vm0, %v55_v27 }
  0x2f   :  { %7757 = vmatprep.mubr.msk.f32.mxu0 %vm87_vm0, %v56_v28 }
  0x32   :  { %7758 = vmatmul.mubr.msk.f32.gmra.mrb[12].mxu0 %vm87_vm0, %v57_v29 }
  0x33   :  { %7760 = vmatprep.mubr.msk.f32.mxu0 %vm87_vm0, %v58_v30 }
  0x36   :  { %7761 = vmatmul.mubr.msk.f32.gmra.mrb[14].mxu0 %vm87_vm0, %v59_v31 }
  0x37   :  { %7763 = vmatprep.mubr.msk.f32.mxu0 %vm87_vm0, %v60_v32 }
  0x3a   :  { %7764 = vmatmul.mubr.msk.f32.gmra.mrb[16].mxu0 %vm87_vm0, %v61_v33 }
  0x3b   :  { %7766 = vmatprep.mubr.msk.f32.mxu0 %vm87_vm0, %v62_v34 }
  0x3e   :  { %7767 = vmatmul.mubr.msk.f32.gmra.mrb[18].mxu0 %vm87_vm0, %v63_v35 }
  0x3f   :  { %7769 = vmatprep.mubr.msk.f32.mxu0 %vm87_vm0, %v64_v36 }
  0x42   :  { %7770 = vmatmul.mubr.msk.f32.gmra.mrb[20].mxu0 %vm87_vm0, %v65_v37 }
  0x43   :  { %7772 = vmatprep.mubr.msk.f32.mxu0 %vm87_vm0, %v66_v38 }
  0x46   :  { %7773 = vmatmul.mubr.msk.f32.gmra.mrb[22].mxu0 %vm87_vm0, %v67_v39 }
  0x47   :  { %7775 = vmatprep.mubr.msk.f32.mxu0 %vm87_vm0, %v68_v40 }
  0x4a   :  { %7776 = vmatmul.mubr.msk.f32.gmra.mrb[24].mxu0 %vm87_vm0, %v69_v41 }
  0x4b   :  { %7778 = vmatprep.mubr.msk.f32.mxu0 %vm87_vm0, %v70_v42 }
  0x4e   :  { %7779 = vmatmul.mubr.msk.f32.gmra.mrb[26].mxu0 %vm87_vm0, %v71_v43 }
  0x4f   :  { %7781 = vmatprep.mubr.msk.f32.mxu0 %vm87_vm0, %v72_v44 }
  0x52   :  { %7782 = vmatmul.mubr.msk.f32.gmra.mrb[28].mxu0 %vm87_vm0, %v73_v45 }
  0x53   :  { %7784 = vmatprep.mubr.msk.f32.mxu0 %vm87_vm0, %v74_v46 }
  0x56   :  { %7785 = vmatmul.mubr.msk.f32.gmra.mrb[30].mxu0 %vm87_vm0, %v75_v47 }
  0x57   :  { %7791 = vmatprep.mubr.msk.f32.mxu0 %vm523_vm2, %v594_v55 }
  0x5a   :  { %7792 = vmatmul.mubr.msk.f32.vlgmr.msra.gmra.mrb[32].mxu0 %vm523_vm2, %v9419_v58 }
  0x5b   :  { %7794 = vmatprep.mubr.msk.f32.mxu0 %vm523_vm2, %v9426_v60  ;;  %8608 = vmatpush3.bf16.msra.mxu0 %v8605_v1 }
  0x5c   :  { %8610 = vmatprep.subr.bf16.mxu0 %v9450_v4 }
  0x5e   :  { %7795 = vmatmul.mubr.msk.f32.gmra.mrb[34].mxu0 %vm523_vm2, %v9430_v61 }
  0x5f   :  { %7797 = vmatprep.mubr.msk.f32.mxu0 %vm523_vm2, %v9434_v62 }
  0xed   :  { %v7741_v6 = vpop.f32.mrb[0].mxu0 }
  0xee   :  { %v421_v8 = vmul.f32 %v7741_v6, %v9456_v5  ;;  %v254_v9 = vpop.f32.mrb[1].mxu0 }
  0xef   :  { %v420_v10 = vmul.f32 %v9456_v5, %v254_v9 }
  0xf0   :  { %v460_v11 = vadd.f32 %v9461_v7, %v421_v8 }
  0xf1   :  { %v459_v12 = vadd.f32 %v9461_v7, %v420_v10  ;;  %v7744_v13 = vpop.f32.mrb[2].mxu0 }
  0xf2   :  { %v492_v14 = vmax.f32 %v460_v11, 0.0  ;;  %v423_v15 = vmul.f32 %v7744_v13, %v9456_v5  ;;  %v264_v16 = vpop.f32.mrb[3].mxu0 }
  0xf3   :  { %v491_v17 = vmax.f32 %v459_v12, 0.0  ;;  %v422_v18 = vmul.f32 %v9456_v5, %v264_v16 }
  0xf4   :  { %530 = vst.msk [vmem:[#allocation2 + $0x30] sm:$0xff] %vm523_vm2, %v492_v14  ;;  %v462_v19 = vadd.f32 %v9461_v7, %v423_v15 }
  0xf5   :  { %529 = vst.msk [vmem:[#allocation2 + $0x28] sm:$0xff] %vm523_vm2, %v491_v17  ;;  %v461_v20 = vadd.f32 %v9461_v7, %v422_v18  ;;  %v7747_v21 = vpop.f32.mrb[4].mxu0 }
  0xf6   :  { %v494_v22 = vmax.f32 %v462_v19, 0.0  ;;  %v425_v23 = vmul.f32 %v7747_v21, %v9456_v5  ;;  %v274_v24 = vpop.f32.mrb[5].mxu0 }
  0xf7   :  { %v493_v25 = vmax.f32 %v461_v20, 0.0  ;;  %v424_v26 = vmul.f32 %v9456_v5, %v274_v24  ;;  %v2376_v24 = vld [vmem:[%s10833_s4 + $0x80] sm:$0xff] }
  0xf8   :  { %532 = vst.msk [vmem:[#allocation2 + $0x40] sm:$0xff] %vm523_vm2, %v494_v22  ;;  %v464_v27 = vadd.f32 %v9461_v7, %v425_v23 }
  0xf9   :  { %531 = vst.msk [vmem:[#allocation2 + $0x38] sm:$0xff] %vm523_vm2, %v493_v25  ;;  %v463_v28 = vadd.f32 %v9461_v7, %v424_v26  ;;  %v7750_v29 = vpop.f32.mrb[6].mxu0  ;;  %v2377_v25 = vld [vmem:[%s10833_s4 + $0x88] sm:$0xff] }
  0xfa   :  { %v496_v30 = vmax.f32 %v464_v27, 0.0  ;;  %v427_v31 = vmul.f32 %v7750_v29, %v9456_v5  ;;  %v284_v32 = vpop.f32.mrb[7].mxu0 }
  0xfb   :  { %v495_v33 = vmax.f32 %v463_v28, 0.0  ;;  %v426_v34 = vmul.f32 %v9456_v5, %v284_v32 }
  0xfc   :  { %534 = vst.msk [vmem:[#allocation2 + $0x50] sm:$0xff] %vm523_vm2, %v496_v30  ;;  %v466_v35 = vadd.f32 %v9461_v7, %v427_v31 }
  0xfd   :  { %533 = vst.msk [vmem:[#allocation2 + $0x48] sm:$0xff] %vm523_vm2, %v495_v33  ;;  %v465_v36 = vadd.f32 %v9461_v7, %v426_v34  ;;  %v7753_v37 = vpop.f32.mrb[8].mxu0  ;;  %v8633_v33 = vpack.c.bf16 %v2377_v25, %v2376_v24 }
  0xfe   :  { %v498_v38 = vmax.f32 %v466_v35, 0.0  ;;  %v429_v39 = vmul.f32 %v7753_v37, %v9456_v5  ;;  %v294_v40 = vpop.f32.mrb[9].mxu0  ;;  %v2603_v37 = vld [vmem:[%s10833_s4 + $0x90] sm:$0xff] }
  0xff   :  { %v497_v41 = vmax.f32 %v465_v36, 0.0  ;;  %v428_v42 = vmul.f32 %v9456_v5, %v294_v40 }
 0x100   :  { %536 = vst.msk [vmem:[#allocation2 + $0x60] sm:$0xff] %vm523_vm2, %v498_v38  ;;  %v468_v43 = vadd.f32 %v9461_v7, %v429_v39  ;;  %v2604_v38 = vld [vmem:[%s10833_s4 + $0x98] sm:$0xff] }
 0x101   :  { %535 = vst.msk [vmem:[#allocation2 + $0x58] sm:$0xff] %vm523_vm2, %v497_v41  ;;  %v467_v44 = vadd.f32 %v9461_v7, %v428_v42  ;;  %v7756_v45 = vpop.f32.mrb[10].mxu0 }
 0x102   :  { %v500_v46 = vmax.f32 %v468_v43, 0.0  ;;  %v431_v47 = vmul.f32 %v7756_v45, %v9456_v5  ;;  %v304_v49 = vpop.f32.mrb[11].mxu0  ;;  %v9548_v45 = vpack.c.bf16 %v2604_v38, %v2603_v37 }
 0x103   :  { %v499_v50 = vmax.f32 %v467_v44, 0.0  ;;  %v430_v51 = vmul.f32 %v9456_v5, %v304_v49 }
 0x104   :  { %538 = vst.msk [vmem:[#allocation2 + $0x70] sm:$0xff] %vm523_vm2, %v500_v46  ;;  %v470_v52 = vadd.f32 %v9461_v7, %v431_v47 }
 0x105   :  { %537 = vst.msk [vmem:[#allocation2 + $0x68] sm:$0xff] %vm523_vm2, %v499_v50  ;;  %v469_v53 = vadd.f32 %v9461_v7, %v430_v51  ;;  %v7759_v55 = vpop.f32.mrb[12].mxu0 }
 0x106   :  { %v502_v56 = vmax.f32 %v470_v52, 0.0  ;;  %v433_v57 = vmul.f32 %v7759_v55, %v9456_v5  ;;  %v314_v63 = vpop.f32.mrb[13].mxu0 }
 0x107   :  { %v501_v0 = vmax.f32 %v469_v53, 0.0  ;;  %v432_v1 = vmul.f32 %v9456_v5, %v314_v63 }
 0x108   :  { %540 = vst.msk [vmem:[#allocation2 + $0x80] sm:$0xff] %vm523_vm2, %v502_v56  ;;  %v472_v2 = vadd.f32 %v9461_v7, %v433_v57 }
 0x109   :  { %539 = vst.msk [vmem:[#allocation2 + $0x78] sm:$0xff] %vm523_vm2, %v501_v0  ;;  %v471_v3 = vadd.f32 %v9461_v7, %v432_v1  ;;  %v7762_v6 = vpop.f32.mrb[14].mxu0 }
 0x10a   :  { %v504_v8 = vmax.f32 %v472_v2, 0.0  ;;  %v435_v9 = vmul.f32 %v7762_v6, %v9456_v5  ;;  %v324_v10 = vpop.f32.mrb[15].mxu0 }
 0x10b   :  { %v503_v11 = vmax.f32 %v471_v3, 0.0  ;;  %v434_v12 = vmul.f32 %v9456_v5, %v324_v10 }
 0x10c   :  { %542 = vst.msk [vmem:[#allocation2 + $0x90] sm:$0xff] %vm523_vm2, %v504_v8  ;;  %v474_v13 = vadd.f32 %v9461_v7, %v435_v9 }
 0x10d   :  { %541 = vst.msk [vmem:[#allocation2 + $0x88] sm:$0xff] %vm523_vm2, %v503_v11  ;;  %v473_v14 = vadd.f32 %v9461_v7, %v434_v12  ;;  %v7765_v15 = vpop.f32.mrb[16].mxu0 }
 0x10e   :  { %v506_v16 = vmax.f32 %v474_v13, 0.0  ;;  %v437_v17 = vmul.f32 %v7765_v15, %v9456_v5  ;;  %v334_v18 = vpop.f32.mrb[17].mxu0 }
 0x10f   :  { %v505_v19 = vmax.f32 %v473_v14, 0.0  ;;  %v436_v20 = vmul.f32 %v9456_v5, %v334_v18 }
 0x110   :  { %544 = vst.msk [vmem:[#allocation2 + $0xa0] sm:$0xff] %vm523_vm2, %v506_v16  ;;  %v476_v21 = vadd.f32 %v9461_v7, %v437_v17 }
 0x111   :  { %543 = vst.msk [vmem:[#allocation2 + $0x98] sm:$0xff] %vm523_vm2, %v505_v19  ;;  %v475_v22 = vadd.f32 %v9461_v7, %v436_v20  ;;  %v7768_v23 = vpop.f32.mrb[18].mxu0 }
 0x112   :  { %v508_v26 = vmax.f32 %v476_v21, 0.0  ;;  %v439_v27 = vmul.f32 %v7768_v23, %v9456_v5  ;;  %v344_v28 = vpop.f32.mrb[19].mxu0 }
 0x113   :  { %v507_v29 = vmax.f32 %v475_v22, 0.0  ;;  %v438_v30 = vmul.f32 %v9456_v5, %v344_v28  ;;  %v9531_v36 = vld [vmem:[#allocation2 + $0x90] sm:$0xff] }
 0x114   :  { %556 = vst.msk [vmem:[#allocation2 + $0x100] sm:$0xff] %vm523_vm2, %v508_v26  ;;  %v478_v31 = vadd.f32 %v9461_v7, %v439_v27  ;;  %v9525_v32 = vld [vmem:[#allocation2 + $0x88] sm:$0xff] }
 0x115   :  { %555 = vst.msk [vmem:[#allocation2 + $0xf8] sm:$0xff] %vm523_vm2, %v507_v29  ;;  %v477_v34 = vadd.f32 %v9461_v7, %v438_v30  ;;  %v7771_v35 = vpop.f32.mrb[20].mxu0  ;;  %7980 = vmatprep.mubr.msk.f32.mxu1 %vm523_vm2, %v9525_v32 }
 0x116   :  { %v510_v39 = vmax.f32 %v478_v31, 0.0  ;;  %v441_v40 = vmul.f32 %v7771_v35, %v9456_v5  ;;  %v354_v41 = vpop.f32.mrb[21].mxu0  ;;  %7981 = vmatmul.mubr.msk.f32.vlgmr.msra.gmra.mrb[0].mxu1 %vm523_vm2, %v9531_v36 }
 0x117   :  { %v509_v42 = vmax.f32 %v477_v34, 0.0  ;;  %v440_v43 = vmul.f32 %v9456_v5, %v354_v41  ;;  %8632 = vmatpush3.bf16.msra.mxu1 %v9421_v59  ;;  %7987 = vmatprep.mubr.msk.f32.mxu1 %vm523_vm2, %v9430_v61 }
 0x118   :  { %558 = vst.msk [vmem:[#allocation2 + $0x110] sm:$0xff] %vm523_vm2, %v510_v39  ;;  %v480_v44 = vadd.f32 %v9461_v7, %v441_v40  ;;  %8634 = vmatprep.subr.bf16.mxu1 %v8633_v33 }
 0x119   :  { %557 = vst.msk [vmem:[#allocation2 + $0x108] sm:$0xff] %vm523_vm2, %v509_v42  ;;  %v479_v46 = vadd.f32 %v9461_v7, %v440_v43  ;;  %v7774_v47 = vpop.f32.mrb[22].mxu0 }
 0x11a   :  { %v512_v49 = vmax.f32 %v480_v44, 0.0  ;;  %v443_v50 = vmul.f32 %v7774_v47, %v9456_v5  ;;  %v364_v51 = vpop.f32.mrb[23].mxu0  ;;  %7988 = vmatmul.mubr.msk.f32.vlgmr.msra.gmra.mrb[2].mxu1 %vm523_vm2, %v9434_v62  ;;  %v576_v44 = vld [vmem:[#allocation2] sm:$0xff] }
 0x11b   :  { %v511_v59 = vmax.f32 %v479_v46, 0.0  ;;  %v442_v52 = vmul.f32 %v9456_v5, %v364_v51  ;;  %8636 = vmatpush3.bf16.msra.mxu1 %v8633_v33  ;;  %v9567_v63 = vld [vmem:[#allocation2 + $0x100] sm:$0xff]  ;;  %v577_v51 = vld [vmem:[#allocation2 + $0x8] sm:$0xff] }
 0x11c   :  { %560 = vst.msk [vmem:[#allocation2 + $0x120] sm:$0xff] %vm523_vm2, %v512_v49  ;;  %v482_v53 = vadd.f32 %v9461_v7, %v443_v50  ;;  %v9558_v55 = vld [vmem:[#allocation2 + $0xf8] sm:$0xff]  ;;  %8638 = vmatprep.subr.bf16.mxu1 %v9548_v45  ;;  %v1241_v49 = vld [vmem:[%s10833_s4 + $0x30] sm:$0xff] }
 0x11d   :  { %559 = vst.msk [vmem:[#allocation2 + $0x118] sm:$0xff] %vm523_vm2, %v511_v59  ;;  %v481_v56 = vadd.f32 %v9461_v7, %v442_v52  ;;  %v7777_v57 = vpop.f32.mrb[24].mxu0  ;;  %7798 = vmatmul.mubr.msk.f32.gmra.mrb[36].mxu0 %vm523_vm2, %v9558_v55  ;;  %7990 = vmatprep.mubr.msk.f32.mxu1 %vm523_vm2, %v9558_v55  ;;  %v1242_v50 = vld [vmem:[%s10833_s4 + $0x38] sm:$0xff]  ;;  %v9664_v59 = vld [vmem:[#allocation2 + $0x10] sm:$0xff] }
 0x11e   :  { %v514_v0 = vmax.f32 %v482_v53, 0.0  ;;  %v445_v1 = vmul.f32 %v7777_v57, %v9456_v5  ;;  %v374_v2 = vpop.f32.mrb[25].mxu0  ;;  %7800 = vmatprep.mubr.msk.f32.mxu0 %vm523_vm2, %v9567_v63  ;;  %7991 = vmatmul.mubr.msk.f32.gmra.mrb[4].mxu1 %vm523_vm2, %v9567_v63  ;;  %v9668_v53 = vld [vmem:[#allocation2 + $0x20] sm:$0xff] }
 0x11f   :  { %v513_v3 = vmax.f32 %v481_v56, 0.0  ;;  %v444_v6 = vmul.f32 %v9456_v5, %v374_v2  ;;  %v9585_v12 = vld [vmem:[#allocation2 + $0x110] sm:$0xff]  ;;  %v9670_v56 = vpack.c.bf16 %v1242_v50, %v1241_v49  ;;  %v9687_v2 = vld [vmem:[#allocation2 + $0x18] sm:$0xff] }
 0x120   :  { %562 = vst.msk [vmem:[#allocation2 + $0x130] sm:$0xff] %vm523_vm2, %v514_v0  ;;  %v484_v8 = vadd.f32 %v9461_v7, %v445_v1  ;;  %v9577_v9 = vld [vmem:[#allocation2 + $0x108] sm:$0xff]  ;;  %v2830_v0 = vld [vmem:[%s10833_s4 + $0xa0] sm:$0xff] }
 0x121   :  { %561 = vst.msk [vmem:[#allocation2 + $0x128] sm:$0xff] %vm523_vm2, %v513_v3  ;;  %v483_v10 = vadd.f32 %v9461_v7, %v444_v6  ;;  %v7780_v11 = vpop.f32.mrb[26].mxu0  ;;  %7801 = vmatmul.mubr.msk.f32.gmra.mrb[38].mxu0 %vm523_vm2, %v9577_v9  ;;  %7993 = vmatprep.mubr.msk.f32.mxu1 %vm523_vm2, %v9577_v9  ;;  %v2831_v1 = vld [vmem:[%s10833_s4 + $0xa8] sm:$0xff] }
 0x122   :  { %v516_v13 = vmax.f32 %v484_v8, 0.0  ;;  %v447_v14 = vmul.f32 %v7780_v11, %v9456_v5  ;;  %v384_v15 = vpop.f32.mrb[27].mxu0  ;;  %7803 = vmatprep.mubr.msk.f32.mxu0 %vm523_vm2, %v9585_v12  ;;  %7994 = vmatmul.mubr.msk.f32.gmra.mrb[6].mxu1 %vm523_vm2, %v9585_v12  ;;  %v8641_v3 = vpack.c.bf16 %v2831_v1, %v2830_v0  ;;  %v9695_v6 = vld [vmem:[#allocation2 + $0x28] sm:$0xff]  ;;  %v9699_v8 = vld [vmem:[#allocation2 + $0x30] sm:$0xff]  ;;  %v10238_v1 = vld [vmem:[#allocation2 + $0x180] sm:$0xff] }
 0x123   :  { %v515_v16 = vmax.f32 %v483_v10, 0.0  ;;  %v446_v17 = vmul.f32 %v9456_v5, %v384_v15  ;;  %v9603_v22 = vld [vmem:[#allocation2 + $0x120] sm:$0xff]  ;;  %v9726_v11 = vld [vmem:[#allocation2 + $0x50] sm:$0xff]  ;;  %v9744_v15 = vld [vmem:[#allocation2 + $0x68] sm:$0xff] }
 0x124   :  { %564 = vst.msk [vmem:[#allocation2 + $0x140] sm:$0xff] %vm523_vm2, %v516_v13  ;;  %v486_v18 = vadd.f32 %v9461_v7, %v447_v14  ;;  %v9595_v19 = vld [vmem:[#allocation2 + $0x118] sm:$0xff]  ;;  %v9714_v10 = vld [vmem:[#allocation2 + $0x40] sm:$0xff] }
 0x125   :  { %563 = vst.msk [vmem:[#allocation2 + $0x138] sm:$0xff] %vm523_vm2, %v515_v16  ;;  %v485_v20 = vadd.f32 %v9461_v7, %v446_v17  ;;  %v7783_v21 = vpop.f32.mrb[28].mxu0  ;;  %7804 = vmatmul.mubr.msk.f32.gmra.mrb[40].mxu0 %vm523_vm2, %v9595_v19  ;;  %7996 = vmatprep.mubr.msk.f32.mxu1 %vm523_vm2, %v9595_v19  ;;  %v9732_v13 = vld [vmem:[#allocation2 + $0x58] sm:$0xff]  ;;  %v9738_v14 = vld [vmem:[#allocation2 + $0x60] sm:$0xff]  ;;  %v9750_v16 = vld [vmem:[#allocation2 + $0x70] sm:$0xff] }
 0x126   :  { %v518_v23 = vmax.f32 %v486_v18, 0.0  ;;  %v449_v24 = vmul.f32 %v7783_v21, %v9456_v5  ;;  %v394_v25 = vpop.f32.mrb[29].mxu0  ;;  %7806 = vmatprep.mubr.msk.f32.mxu0 %vm523_vm2, %v9603_v22  ;;  %7997 = vmatmul.mubr.msk.f32.gmra.mrb[8].mxu1 %vm523_vm2, %v9603_v22  ;;  %v9756_v17 = vld [vmem:[#allocation2 + $0x78] sm:$0xff]  ;;  %v9762_v18 = vld [vmem:[#allocation2 + $0x80] sm:$0xff]  ;;  %v1469_v21 = vld [vmem:[%s10833_s4 + $0x48] sm:$0xff] }
 0x127   :  { %v517_v26 = vmax.f32 %v485_v20, 0.0  ;;  %v448_v27 = vmul.f32 %v9456_v5, %v394_v25  ;;  %v9621_v31 = vld [vmem:[#allocation2 + $0x130] sm:$0xff]  ;;  %v1468_v20 = vld [vmem:[%s10833_s4 + $0x40] sm:$0xff]  ;;  %v10198_v49 = vld [vmem:[#allocation2 + $0x118] sm:$0xff] }
 0x128   :  { %566 = vst.msk [vmem:[#allocation2 + $0x150] sm:$0xff] %vm523_vm2, %v518_v23  ;;  %v488_v28 = vadd.f32 %v9461_v7, %v449_v24  ;;  %v9613_v29 = vld [vmem:[#allocation2 + $0x128] sm:$0xff]  ;;  %v8617_v23 = vpack.c.bf16 %v1469_v21, %v1468_v20  ;;  %v9781_v24 = vld [vmem:[#allocation2 + $0x98] sm:$0xff]  ;;  %v3057_v25 = vld [vmem:[%s10833_s4 + $0xb0] sm:$0xff] }
 0x129   :  { %565 = vst.msk [vmem:[#allocation2 + $0x148] sm:$0xff] %vm523_vm2, %v517_v26  ;;  %v487_v30 = vadd.f32 %v9461_v7, %v448_v27  ;;  %7807 = vmatmul.mubr.msk.f32.gmra.mrb[42].mxu0 %vm523_vm2, %v9613_v29  ;;  %7999 = vmatprep.mubr.msk.f32.mxu1 %vm523_vm2, %v9613_v29  ;;  %v7786_v33 = vpop.f32.mrb[30].mxu0  ;;  %v3058_v26 = vld [vmem:[%s10833_s4 + $0xb8] sm:$0xff]  ;;  %v10202_v50 = vld [vmem:[#allocation2 + $0x120] sm:$0xff]  ;;  %v4418_v20 = vld [vmem:[#allocation2 + $0x188] sm:$0xff] }
 0x12a   :  { %v520_v34 = vmax.f32 %v488_v28, 0.0  ;;  %7809 = vmatprep.mubr.msk.f32.mxu0 %vm523_vm2, %v9621_v31  ;;  %8000 = vmatmul.mubr.msk.f32.gmra.mrb[10].mxu1 %vm523_vm2, %v9621_v31  ;;  %v451_v35 = vmul.f32 %v7786_v33, %v9456_v5  ;;  %v404_v37 = vpop.f32.mrb[31].mxu0  ;;  %v8645_v27 = vpack.c.bf16 %v3058_v26, %v3057_v25  ;;  %v1695_v28 = vld [vmem:[%s10833_s4 + $0x50] sm:$0xff]  ;;  %v5100_v21 = vld [vmem:[%s10833_s4 + $0x140] sm:$0xff] }
 0x12b   :  { %v519_v38 = vmax.f32 %v487_v30, 0.0  ;;  %v450_v39 = vmul.f32 %v9456_v5, %v404_v37  ;;  %v9638_v42 = vld [vmem:[#allocation2 + $0x140] sm:$0xff]  ;;  %v1696_v30 = vld [vmem:[%s10833_s4 + $0x58] sm:$0xff]  ;;  %v3285_v37 = vld [vmem:[%s10833_s4 + $0xc8] sm:$0xff] }
 0x12c   :  { %568 = vst.msk [vmem:[#allocation2 + $0x160] sm:$0xff] %vm523_vm2, %v520_v34  ;;  %v9630_v40 = vld [vmem:[#allocation2 + $0x138] sm:$0xff]  ;;  %v490_v41 = vadd.f32 %v9461_v7, %v451_v35  ;;  %v8621_v34 = vpack.c.bf16 %v1696_v30, %v1695_v28  ;;  %v3284_v35 = vld [vmem:[%s10833_s4 + $0xc0] sm:$0xff]  ;;  %v4631_v26 = vld [vmem:[#allocation2 + $0x50] sm:$0xff] }
 0x12d   :  { %567 = vst.msk [vmem:[#allocation2 + $0x158] sm:$0xff] %vm523_vm2, %v519_v38  ;;  %7810 = vmatmul.mubr.msk.f32.gmra.mrb[44].mxu0 %vm523_vm2, %v9630_v40  ;;  %8002 = vmatprep.mubr.msk.f32.mxu1 %vm523_vm2, %v9630_v40  ;;  %v489_v43 = vadd.f32 %v9461_v7, %v450_v39  ;;  %v9932_v38 = vld [vmem:[#allocation2 + $0xa0] sm:$0xff]  ;;  %v3511_v39 = vld [vmem:[%s10833_s4 + $0xd0] sm:$0xff]  ;;  %v4634_v30 = vld [vmem:[#allocation2 + $0x68] sm:$0xff] }
 0x12e   :  { %7812 = vmatprep.mubr.msk.f32.mxu0 %vm523_vm2, %v9638_v42  ;;  %8003 = vmatmul.mubr.msk.f32.gmra.mrb[12].mxu1 %vm523_vm2, %v9638_v42  ;;  %v522_v5 = vmax.f32 %v490_v41, 0.0  ;;  %v3512_v41 = vld [vmem:[%s10833_s4 + $0xd8] sm:$0xff]  ;;  %v4633_v28 = vld [vmem:[#allocation2 + $0x60] sm:$0xff] }
 0x12f   :  { %v521_v46 = vmax.f32 %v489_v43, 0.0  ;;  %v9652_v7 = vld [vmem:[#allocation2 + $0x150] sm:$0xff]  ;;  %v8653_v43 = vpack.c.bf16 %v3512_v41, %v3511_v39  ;;  %v4645_v39 = vld [vmem:[#allocation2 + $0xc0] sm:$0xff] }
 0x130   :  { %v9645_v47 = vld [vmem:[#allocation2 + $0x148] sm:$0xff]  ;;  %570 = vst.msk [vmem:[#allocation2 + $0x170] sm:$0xff] %vm523_vm2, %v522_v5 }
 0x131   :  { %7813 = vmatmul.mubr.msk.f32.gmra.mrb[46].mxu0 %vm523_vm2, %v9645_v47  ;;  %8005 = vmatprep.mubr.msk.f32.mxu1 %vm523_vm2, %v9645_v47  ;;  %569 = vst.msk [vmem:[#allocation2 + $0x168] sm:$0xff] %vm523_vm2, %v521_v46  ;;  %v3739_v46 = vld [vmem:[%s10833_s4 + $0xe8] sm:$0xff] }
 0x132   :  { %8006 = vmatmul.mubr.msk.f32.gmra.mrb[14].mxu1 %vm523_vm2, %v9652_v7  ;;  %7819 = vmatprep.mubr.msk.f32.mxu0 %vm523_vm2, %v576_v44  ;;  %v3738_v44 = vld [vmem:[%s10833_s4 + $0xe0] sm:$0xff]  ;;  %v10222_v0 = vld [vmem:[#allocation2 + $0x148] sm:$0xff] }
 0x133   :  { %v9675_v57 = vld [vmem:[#allocation2 + $0x160] sm:$0xff] }
 0x134   :  { %v9666_v52 = vld [vmem:[#allocation2 + $0x158] sm:$0xff] }
 0x135   :  { %7820 = vmatmul.mubr.msk.f32.vlgmr.msra.gmra.mrb[32].mxu0 %vm523_vm2, %v577_v51  ;;  %8008 = vmatprep.mubr.msk.f32.mxu1 %vm523_vm2, %v9666_v52 }
 0x136   :  { %8009 = vmatmul.mubr.msk.f32.gmra.mrb[0].mxu1 %vm523_vm2, %v9675_v57  ;;  %7822 = vmatprep.mubr.msk.f32.mxu0 %vm523_vm2, %v9664_v59 }
 0x137   :  { %8015 = vmatprep.mubr.msk.f32.mxu1 %vm523_vm2, %v9668_v53  ;;  %8612 = vmatpush3.bf16.msra.mxu0 %v9450_v4  ;;  %v9708_v4 = vld [vmem:[#allocation2 + $0x38] sm:$0xff]  ;;  %v10005_v5 = vld [vmem:[#allocation2 + $0x170] sm:$0xff] }
 0x138   :  { %8614 = vmatprep.subr.bf16.mxu0 %v9670_v56  ;;  %v9858_v33 = vld [vmem:[#allocation2 + $0x168] sm:$0xff] }
 0x139   :  { %7823 = vmatmul.mubr.msk.f32.gmra.mrb[34].mxu0 %vm523_vm2, %v9687_v2 }
 0x13a   :  { %8016 = vmatmul.mubr.msk.f32.vlgmr.msra.gmra.mrb[2].mxu1 %vm523_vm2, %v9695_v6  ;;  %7825 = vmatprep.mubr.msk.f32.mxu0 %vm523_vm2, %v9668_v53 }
 0x13b   :  { %8640 = vmatpush3.bf16.msra.mxu1 %v9548_v45  ;;  %8018 = vmatprep.mubr.msk.f32.mxu1 %vm523_vm2, %v9699_v8  ;;  %v9720_v45 = vld [vmem:[#allocation2 + $0x48] sm:$0xff] }
 0x13c   :  { %8642 = vmatprep.subr.bf16.mxu1 %v8641_v3 }
 0x13d   :  { %7826 = vmatmul.mubr.msk.f32.gmra.mrb[36].mxu0 %vm523_vm2, %v9695_v6 }
 0x13e   :  { %7828 = vmatprep.mubr.msk.f32.mxu0 %vm523_vm2, %v9699_v8  ;;  %8019 = vmatmul.mubr.msk.f32.gmra.mrb[4].mxu1 %vm523_vm2, %v9708_v4 }
 0x13f   :  { %8021 = vmatprep.mubr.msk.f32.mxu1 %vm523_vm2, %v9714_v10 }
 0x141   :  { %7829 = vmatmul.mubr.msk.f32.gmra.mrb[38].mxu0 %vm523_vm2, %v9708_v4 }
 0x142   :  { %7831 = vmatprep.mubr.msk.f32.mxu0 %vm523_vm2, %v9714_v10  ;;  %8022 = vmatmul.mubr.msk.f32.gmra.mrb[6].mxu1 %vm523_vm2, %v9720_v45 }
 0x143   :  { %8024 = vmatprep.mubr.msk.f32.mxu1 %vm523_vm2, %v9726_v11 }
 0x145   :  { %7832 = vmatmul.mubr.msk.f32.gmra.mrb[40].mxu0 %vm523_vm2, %v9720_v45 }
 0x146   :  { %7834 = vmatprep.mubr.msk.f32.mxu0 %vm523_vm2, %v9726_v11  ;;  %8025 = vmatmul.mubr.msk.f32.gmra.mrb[8].mxu1 %vm523_vm2, %v9732_v13 }
 0x147   :  { %8027 = vmatprep.mubr.msk.f32.mxu1 %vm523_vm2, %v9738_v14 }
 0x149   :  { %7835 = vmatmul.mubr.msk.f32.gmra.mrb[42].mxu0 %vm523_vm2, %v9732_v13 }
 0x14a   :  { %7837 = vmatprep.mubr.msk.f32.mxu0 %vm523_vm2, %v9738_v14  ;;  %8028 = vmatmul.mubr.msk.f32.gmra.mrb[10].mxu1 %vm523_vm2, %v9744_v15 }
 0x14b   :  { %8030 = vmatprep.mubr.msk.f32.mxu1 %vm523_vm2, %v9750_v16 }
 0x14d   :  { %7838 = vmatmul.mubr.msk.f32.gmra.mrb[44].mxu0 %vm523_vm2, %v9744_v15 }
 0x14e   :  { %7840 = vmatprep.mubr.msk.f32.mxu0 %vm523_vm2, %v9750_v16  ;;  %8031 = vmatmul.mubr.msk.f32.gmra.mrb[12].mxu1 %vm523_vm2, %v9756_v17 }
 0x14f   :  { %8033 = vmatprep.mubr.msk.f32.mxu1 %vm523_vm2, %v9762_v18 }
 0x151   :  { %7841 = vmatmul.mubr.msk.f32.gmra.mrb[46].mxu0 %vm523_vm2, %v9756_v17 }
 0x152   :  { %8034 = vmatmul.mubr.msk.f32.gmra.mrb[14].mxu1 %vm523_vm2, %v9525_v32  ;;  %7847 = vmatprep.mubr.msk.f32.mxu0 %vm523_vm2, %v577_v51  ;;  %v10206_v51 = vld [vmem:[#allocation2 + $0x128] sm:$0xff] }
 0x153   :  { %8036 = vmatprep.mubr.msk.f32.mxu1 %vm523_vm2, %v9531_v36 }
 0x155   :  { %7848 = vmatmul.mubr.msk.f32.vlgmr.msra.gmra.mrb[32].mxu0 %vm523_vm2, %v9664_v59 }
 0x156   :  { %8037 = vmatmul.mubr.msk.f32.gmra.mrb[0].mxu1 %vm523_vm2, %v9781_v24  ;;  %7850 = vmatprep.mubr.msk.f32.mxu0 %vm523_vm2, %v9687_v2 }
 0x157   :  { %8043 = vmatprep.mubr.msk.f32.mxu1 %vm523_vm2, %v9434_v62  ;;  %8616 = vmatpush3.bf16.msra.mxu0 %v9670_v56  ;;  %v10218_v56 = vld [vmem:[#allocation2 + $0x140] sm:$0xff] }
 0x158   :  { %8618 = vmatprep.subr.bf16.mxu0 %v8617_v23 }
 0x159   :  { %7851 = vmatmul.mubr.msk.f32.gmra.mrb[34].mxu0 %vm523_vm2, %v9668_v53 }
 0x15a   :  { %7853 = vmatprep.mubr.msk.f32.mxu0 %vm523_vm2, %v9695_v6  ;;  %8044 = vmatmul.mubr.msk.f32.vlgmr.msra.gmra.mrb[2].mxu1 %vm523_vm2, %v9558_v55 }
 0x15b   :  { %8644 = vmatpush3.bf16.msra.mxu1 %v8641_v3  ;;  %8046 = vmatprep.mubr.msk.f32.mxu1 %vm523_vm2, %v9567_v63  ;;  %v4873_v3 = vld [vmem:[%s10833_s4 + $0x130] sm:$0xff] }
 0x15c   :  { %8646 = vmatprep.subr.bf16.mxu1 %v8645_v27 }
 0x15d   :  { %7854 = vmatmul.mubr.msk.f32.gmra.mrb[36].mxu0 %vm523_vm2, %v9699_v8 }
 0x15e   :  { %7856 = vmatprep.mubr.msk.f32.mxu0 %vm523_vm2, %v9708_v4  ;;  %8047 = vmatmul.mubr.msk.f32.gmra.mrb[4].mxu1 %vm523_vm2, %v9577_v9 }
 0x15f   :  { %8049 = vmatprep.mubr.msk.f32.mxu1 %vm523_vm2, %v9585_v12 }
 0x161   :  { %7857 = vmatmul.mubr.msk.f32.gmra.mrb[38].mxu0 %vm523_vm2, %v9714_v10 }
 0x162   :  { %7859 = vmatprep.mubr.msk.f32.mxu0 %vm523_vm2, %v9720_v45  ;;  %8050 = vmatmul.mubr.msk.f32.gmra.mrb[6].mxu1 %vm523_vm2, %v9595_v19 }
 0x163   :  { %8052 = vmatprep.mubr.msk.f32.mxu1 %vm523_vm2, %v9603_v22 }
 0x165   :  { %7860 = vmatmul.mubr.msk.f32.gmra.mrb[40].mxu0 %vm523_vm2, %v9726_v11 }
 0x166   :  { %7862 = vmatprep.mubr.msk.f32.mxu0 %vm523_vm2, %v9732_v13  ;;  %8053 = vmatmul.mubr.msk.f32.gmra.mrb[8].mxu1 %vm523_vm2, %v9613_v29 }
 0x167   :  { %8055 = vmatprep.mubr.msk.f32.mxu1 %vm523_vm2, %v9621_v31 }
 0x169   :  { %7863 = vmatmul.mubr.msk.f32.gmra.mrb[42].mxu0 %vm523_vm2, %v9738_v14 }
 0x16a   :  { %7865 = vmatprep.mubr.msk.f32.mxu0 %vm523_vm2, %v9744_v15  ;;  %8056 = vmatmul.mubr.msk.f32.gmra.mrb[10].mxu1 %vm523_vm2, %v9630_v40 }
 0x16b   :  { %8058 = vmatprep.mubr.msk.f32.mxu1 %vm523_vm2, %v9638_v42 }
 0x16d   :  { %7866 = vmatmul.mubr.msk.f32.gmra.mrb[44].mxu0 %vm523_vm2, %v9750_v16 }
 0x16e   :  { %7868 = vmatprep.mubr.msk.f32.mxu0 %vm523_vm2, %v9756_v17  ;;  %8059 = vmatmul.mubr.msk.f32.gmra.mrb[12].mxu1 %vm523_vm2, %v9645_v47 }
 0x16f   :  { %8061 = vmatprep.mubr.msk.f32.mxu1 %vm523_vm2, %v9652_v7 }
 0x171   :  { %7869 = vmatmul.mubr.msk.f32.gmra.mrb[46].mxu0 %vm523_vm2, %v9762_v18 }
 0x172   :  { %8062 = vmatmul.mubr.msk.f32.gmra.mrb[14].mxu1 %vm523_vm2, %v9666_v52  ;;  %7875 = vmatprep.mubr.msk.f32.mxu0 %vm523_vm2, %v9419_v58  ;;  %v8649_v58 = vpack.c.bf16 %v3285_v37, %v3284_v35  ;;  %v4636_v35 = vld [vmem:[#allocation2 + $0x78] sm:$0xff]  ;;  %v4637_v37 = vld [vmem:[#allocation2 + $0x80] sm:$0xff] }
 0x173   :  { %8064 = vmatprep.mubr.msk.f32.mxu1 %vm523_vm2, %v9675_v57 }
 0x175   :  { %7876 = vmatmul.mubr.msk.f32.vlgmr.msra.gmra.mrb[32].mxu0 %vm523_vm2, %v9426_v60 }
 0x176   :  { %8065 = vmatmul.mubr.msk.f32.gmra.mrb[0].mxu1 %vm523_vm2, %v9858_v33  ;;  %7878 = vmatprep.mubr.msk.f32.mxu0 %vm523_vm2, %v9430_v61 }
 0x177   :  { %8071 = vmatprep.mubr.msk.f32.mxu1 %vm523_vm2, %v9695_v6  ;;  %8620 = vmatpush3.bf16.msra.mxu0 %v8617_v23  ;;  %v5101_v23 = vld [vmem:[%s10833_s4 + $0x148] sm:$0xff] }
 0x178   :  { %8622 = vmatprep.subr.bf16.mxu0 %v8621_v34  ;;  %v8681_v25 = vpack.c.bf16 %v5101_v23, %v5100_v21 }
 0x179   :  { %7879 = vmatmul.mubr.msk.f32.gmra.mrb[34].mxu0 %vm523_vm2, %v9434_v62 }
 0x17a   :  { %7881 = vmatprep.mubr.msk.f32.mxu0 %vm523_vm2, %v9558_v55  ;;  %8072 = vmatmul.mubr.msk.f32.vlgmr.msra.gmra.mrb[2].mxu1 %vm523_vm2, %v9699_v8 }
 0x17b   :  { %8648 = vmatpush3.bf16.msra.mxu1 %v8645_v27  ;;  %8074 = vmatprep.mubr.msk.f32.mxu1 %vm523_vm2, %v9708_v4  ;;  %v4632_v27 = vld [vmem:[#allocation2 + $0x58] sm:$0xff] }
 0x17c   :  { %8650 = vmatprep.subr.bf16.mxu1 %v8649_v58 }
 0x17d   :  { %7882 = vmatmul.mubr.msk.f32.gmra.mrb[36].mxu0 %vm523_vm2, %v9567_v63 }
 0x17e   :  { %7884 = vmatprep.mubr.msk.f32.mxu0 %vm523_vm2, %v9577_v9  ;;  %8075 = vmatmul.mubr.msk.f32.gmra.mrb[4].mxu1 %vm523_vm2, %v9714_v10 }
 0x17f   :  { %8077 = vmatprep.mubr.msk.f32.mxu1 %vm523_vm2, %v9720_v45 }
 0x181   :  { %7885 = vmatmul.mubr.msk.f32.gmra.mrb[38].mxu0 %vm523_vm2, %v9585_v12 }
 0x182   :  { %7887 = vmatprep.mubr.msk.f32.mxu0 %vm523_vm2, %v9595_v19  ;;  %8078 = vmatmul.mubr.msk.f32.gmra.mrb[6].mxu1 %vm523_vm2, %v9726_v11 }
 0x183   :  { %8080 = vmatprep.mubr.msk.f32.mxu1 %vm523_vm2, %v9732_v13 }
 0x185   :  { %7888 = vmatmul.mubr.msk.f32.gmra.mrb[40].mxu0 %vm523_vm2, %v9603_v22 }
 0x186   :  { %7890 = vmatprep.mubr.msk.f32.mxu0 %vm523_vm2, %v9613_v29  ;;  %8081 = vmatmul.mubr.msk.f32.gmra.mrb[8].mxu1 %vm523_vm2, %v9738_v14 }
 0x187   :  { %8083 = vmatprep.mubr.msk.f32.mxu1 %vm523_vm2, %v9744_v15 }
 0x189   :  { %7891 = vmatmul.mubr.msk.f32.gmra.mrb[42].mxu0 %vm523_vm2, %v9621_v31 }
 0x18a   :  { %7893 = vmatprep.mubr.msk.f32.mxu0 %vm523_vm2, %v9630_v40  ;;  %8084 = vmatmul.mubr.msk.f32.gmra.mrb[10].mxu1 %vm523_vm2, %v9750_v16 }
 0x18b   :  { %8086 = vmatprep.mubr.msk.f32.mxu1 %vm523_vm2, %v9756_v17 }
 0x18d   :  { %7894 = vmatmul.mubr.msk.f32.gmra.mrb[44].mxu0 %vm523_vm2, %v9638_v42 }
 0x18e   :  { %7896 = vmatprep.mubr.msk.f32.mxu0 %vm523_vm2, %v9645_v47  ;;  %8087 = vmatmul.mubr.msk.f32.gmra.mrb[12].mxu1 %vm523_vm2, %v9762_v18 }
 0x18f   :  { %8089 = vmatprep.mubr.msk.f32.mxu1 %vm523_vm2, %v9525_v32 }
 0x191   :  { %7897 = vmatmul.mubr.msk.f32.gmra.mrb[46].mxu0 %vm523_vm2, %v9652_v7 }
 0x192   :  { %8090 = vmatmul.mubr.msk.f32.gmra.mrb[14].mxu1 %vm523_vm2, %v9531_v36  ;;  %7903 = vmatprep.mubr.msk.f32.mxu0 %vm523_vm2, %v9664_v59  ;;  %v10210_v59 = vld [vmem:[#allocation2 + $0x130] sm:$0xff] }
 0x193   :  { %8092 = vmatprep.mubr.msk.f32.mxu1 %vm523_vm2, %v9781_v24 }
 0x195   :  { %7904 = vmatmul.mubr.msk.f32.vlgmr.msra.gmra.mrb[32].mxu0 %vm523_vm2, %v9687_v2 }
 0x196   :  { %8093 = vmatmul.mubr.msk.f32.gmra.mrb[0].mxu1 %vm523_vm2, %v9932_v38  ;;  %7906 = vmatprep.mubr.msk.f32.mxu0 %vm523_vm2, %v9668_v53 }
 0x197   :  { %8099 = vmatprep.mubr.msk.f32.mxu1 %vm523_vm2, %v9558_v55  ;;  %8624 = vmatpush3.bf16.msra.mxu0 %v8621_v34  ;;  %v4635_v34 = vld [vmem:[#allocation2 + $0x70] sm:$0xff] }
 0x198   :  { %8626 = vmatprep.subr.bf16.mxu0 %v9408_v54 }
 0x199   :  { %7907 = vmatmul.mubr.msk.f32.gmra.mrb[34].mxu0 %vm523_vm2, %v9695_v6 }
 0x19a   :  { %7909 = vmatprep.mubr.msk.f32.mxu0 %vm523_vm2, %v9699_v8  ;;  %8100 = vmatmul.mubr.msk.f32.vlgmr.msra.gmra.mrb[2].mxu1 %vm523_vm2, %v9567_v63 }
 0x19b   :  { %8652 = vmatpush3.bf16.msra.mxu1 %v8649_v58  ;;  %8102 = vmatprep.mubr.msk.f32.mxu1 %vm523_vm2, %v9577_v9  ;;  %v4640_v58 = vld [vmem:[#allocation2 + $0x98] sm:$0xff] }
 0x19c   :  { %8654 = vmatprep.subr.bf16.mxu1 %v8653_v43 }
 0x19d   :  { %7910 = vmatmul.mubr.msk.f32.gmra.mrb[36].mxu0 %vm523_vm2, %v9708_v4 }
 0x19e   :  { %7912 = vmatprep.mubr.msk.f32.mxu0 %vm523_vm2, %v9714_v10  ;;  %8103 = vmatmul.mubr.msk.f32.gmra.mrb[4].mxu1 %vm523_vm2, %v9585_v12 }
 0x19f   :  { %8105 = vmatprep.mubr.msk.f32.mxu1 %vm523_vm2, %v9595_v19 }
 0x1a1   :  { %7913 = vmatmul.mubr.msk.f32.gmra.mrb[38].mxu0 %vm523_vm2, %v9720_v45 }
 0x1a2   :  { %7915 = vmatprep.mubr.msk.f32.mxu0 %vm523_vm2, %v9726_v11  ;;  %8106 = vmatmul.mubr.msk.f32.gmra.mrb[6].mxu1 %vm523_vm2, %v9603_v22 }
 0x1a3   :  { %8108 = vmatprep.mubr.msk.f32.mxu1 %vm523_vm2, %v9613_v29 }
 0x1a5   :  { %7916 = vmatmul.mubr.msk.f32.gmra.mrb[40].mxu0 %vm523_vm2, %v9732_v13 }
 0x1a6   :  { %7918 = vmatprep.mubr.msk.f32.mxu0 %vm523_vm2, %v9738_v14  ;;  %8109 = vmatmul.mubr.msk.f32.gmra.mrb[8].mxu1 %vm523_vm2, %v9621_v31 }
 0x1a7   :  { %8111 = vmatprep.mubr.msk.f32.mxu1 %vm523_vm2, %v9630_v40 }
 0x1a9   :  { %7919 = vmatmul.mubr.msk.f32.gmra.mrb[42].mxu0 %vm523_vm2, %v9744_v15 }
 0x1aa   :  { %7921 = vmatprep.mubr.msk.f32.mxu0 %vm523_vm2, %v9750_v16  ;;  %8112 = vmatmul.mubr.msk.f32.gmra.mrb[10].mxu1 %vm523_vm2, %v9638_v42 }
 0x1ab   :  { %8114 = vmatprep.mubr.msk.f32.mxu1 %vm523_vm2, %v9645_v47 }
 0x1ad   :  { %7922 = vmatmul.mubr.msk.f32.gmra.mrb[44].mxu0 %vm523_vm2, %v9756_v17 }
 0x1ae   :  { %7924 = vmatprep.mubr.msk.f32.mxu0 %vm523_vm2, %v9762_v18  ;;  %8115 = vmatmul.mubr.msk.f32.gmra.mrb[12].mxu1 %vm523_vm2, %v9652_v7 }
 0x1af   :  { %8117 = vmatprep.mubr.msk.f32.mxu1 %vm523_vm2, %v9666_v52 }
 0x1b1   :  { %7925 = vmatmul.mubr.msk.f32.gmra.mrb[46].mxu0 %vm523_vm2, %v9525_v32 }
 0x1b2   :  { %8118 = vmatmul.mubr.msk.f32.gmra.mrb[14].mxu1 %vm523_vm2, %v9675_v57  ;;  %7931 = vmatprep.mubr.msk.f32.mxu0 %vm523_vm2, %v9426_v60  ;;  %v8657_v60 = vpack.c.bf16 %v3739_v46, %v3738_v44 }
 0x1b3   :  { %8120 = vmatprep.mubr.msk.f32.mxu1 %vm523_vm2, %v9858_v33 }
 0x1b5   :  { %7932 = vmatmul.mubr.msk.f32.vlgmr.msra.gmra.mrb[32].mxu0 %vm523_vm2, %v9430_v61  ;;  %v3965_v61 = vld [vmem:[%s10833_s4 + $0xf0] sm:$0xff] }
 0x1b6   :  { %8121 = vmatmul.mubr.msk.f32.gmra.mrb[0].mxu1 %vm523_vm2, %v10005_v5  ;;  %7934 = vmatprep.mubr.msk.f32.mxu0 %vm523_vm2, %v9434_v62  ;;  %v3966_v62 = vld [vmem:[%s10833_s4 + $0xf8] sm:$0xff] }
 0x1b7   :  { %8127 = vmatprep.mubr.msk.f32.mxu1 %vm523_vm2, %v9699_v8  ;;  %8628 = vmatpush3.bf16.msra.mxu0 %v9408_v54  ;;  %v10076_v54 = vld [vmem:[#allocation2 + $0xa8] sm:$0xff] }
 0x1b9   :  { %7935 = vmatmul.mubr.msk.f32.gmra.mrb[34].mxu0 %vm523_vm2, %v9558_v55  ;;  %v4192_v55 = vld [vmem:[%s10833_s4 + $0x100] sm:$0xff] }
 0x1ba   :  { %7937 = vmatprep.mubr.msk.f32.mxu0 %vm523_vm2, %v9567_v63  ;;  %8128 = vmatmul.mubr.msk.f32.vlgmr.msra.gmra.mrb[2].mxu1 %vm523_vm2, %v9708_v4 }
 0x1bb   :  { %8656 = vmatpush3.bf16.msra.mxu1 %v8653_v43  ;;  %8130 = vmatprep.mubr.msk.f32.mxu1 %vm523_vm2, %v9714_v10 }
 0x1bc   :  { %8658 = vmatprep.subr.bf16.mxu1 %v8657_v60 }
 0x1bd   :  { %7938 = vmatmul.mubr.msk.f32.gmra.mrb[36].mxu0 %vm523_vm2, %v9577_v9 }
 0x1be   :  { %7940 = vmatprep.mubr.msk.f32.mxu0 %vm523_vm2, %v9585_v12  ;;  %8131 = vmatmul.mubr.msk.f32.gmra.mrb[4].mxu1 %vm523_vm2, %v9720_v45 }
 0x1bf   :  { %8133 = vmatprep.mubr.msk.f32.mxu1 %vm523_vm2, %v9726_v11 }
 0x1c1   :  { %7941 = vmatmul.mubr.msk.f32.gmra.mrb[38].mxu0 %vm523_vm2, %v9595_v19 }
 0x1c2   :  { %7943 = vmatprep.mubr.msk.f32.mxu0 %vm523_vm2, %v9603_v22  ;;  %8134 = vmatmul.mubr.msk.f32.gmra.mrb[6].mxu1 %vm523_vm2, %v9732_v13 }
 0x1c3   :  { %8136 = vmatprep.mubr.msk.f32.mxu1 %vm523_vm2, %v9738_v14 }
 0x1c5   :  { %7944 = vmatmul.mubr.msk.f32.gmra.mrb[40].mxu0 %vm523_vm2, %v9613_v29 }
 0x1c6   :  { %7946 = vmatprep.mubr.msk.f32.mxu0 %vm523_vm2, %v9621_v31  ;;  %8137 = vmatmul.mubr.msk.f32.gmra.mrb[8].mxu1 %vm523_vm2, %v9744_v15 }
 0x1c7   :  { %8139 = vmatprep.mubr.msk.f32.mxu1 %vm523_vm2, %v9750_v16 }
 0x1c9   :  { %7947 = vmatmul.mubr.msk.f32.gmra.mrb[42].mxu0 %vm523_vm2, %v9630_v40 }
 0x1ca   :  { %7949 = vmatprep.mubr.msk.f32.mxu0 %vm523_vm2, %v9638_v42  ;;  %8140 = vmatmul.mubr.msk.f32.gmra.mrb[10].mxu1 %vm523_vm2, %v9756_v17 }
 0x1cb   :  { %8142 = vmatprep.mubr.msk.f32.mxu1 %vm523_vm2, %v9762_v18 }
 0x1cd   :  { %7950 = vmatmul.mubr.msk.f32.gmra.mrb[44].mxu0 %vm523_vm2, %v9645_v47 }
 0x1ce   :  { %7952 = vmatprep.mubr.msk.f32.mxu0 %vm523_vm2, %v9652_v7  ;;  %8143 = vmatmul.mubr.msk.f32.gmra.mrb[12].mxu1 %vm523_vm2, %v9525_v32  ;;  %v8661_v32 = vpack.c.bf16 %v3966_v62, %v3965_v61 }
 0x1cf   :  { %8145 = vmatprep.mubr.msk.f32.mxu1 %vm523_vm2, %v9531_v36  ;;  %v10142_v36 = vld [vmem:[#allocation2 + $0x178] sm:$0xff] }
 0x1d1   :  { %7953 = vmatmul.mubr.msk.f32.gmra.mrb[46].mxu0 %vm523_vm2, %v9666_v52 }
 0x1d2   :  { %8146 = vmatmul.mubr.msk.f32.gmra.mrb[14].mxu1 %vm523_vm2, %v9781_v24  ;;  %7959 = vmatprep.mubr.msk.f32.mxu0 %vm523_vm2, %v9687_v2  ;;  %v10278_v2 = vld [vmem:[#allocation2 + $0xb8] sm:$0xff] }
 0x1d3   :  { %8148 = vmatprep.mubr.msk.f32.mxu1 %vm523_vm2, %v9932_v38 }
 0x1d5   :  { %7960 = vmatmul.mubr.msk.f32.vlgmr.msra.gmra.mrb[32].mxu0 %vm523_vm2, %v9668_v53  ;;  %v10214_v53 = vld [vmem:[#allocation2 + $0x138] sm:$0xff] }
 0x1d6   :  { %7962 = vmatprep.mubr.msk.f32.mxu0 %vm523_vm2, %v9695_v6  ;;  %8149 = vmatmul.mubr.msk.f32.gmra.mrb[0].mxu1 %vm523_vm2, %v10076_v54  ;;  %v4874_v6 = vld [vmem:[%s10833_s4 + $0x138] sm:$0xff] }
 0x1d7   :  { %8155 = vmatprep.mubr.msk.f32.mxu1 %vm523_vm2, %v9567_v63  ;;  %v4193_v63 = vld [vmem:[%s10833_s4 + $0x108] sm:$0xff] }
 0x1d9   :  { %7963 = vmatmul.mubr.msk.f32.gmra.mrb[34].mxu0 %vm523_vm2, %v9699_v8  ;;  %v9125_v8 = vmov 0.0|0.0  }
 0x1da   :  { %7965 = vmatprep.mubr.msk.f32.mxu0 %vm523_vm2, %v9708_v4  ;;  %8156 = vmatmul.mubr.msk.f32.vlgmr.msra.gmra.mrb[2].mxu1 %vm523_vm2, %v9577_v9  ;;  %v8665_v9 = vpack.c.bf16 %v4193_v63, %v4192_v55  ;;  %v4872_v55 = vld [vmem:[#allocation2 + $0x190] sm:$0xff] }
 0x1db   :  { %8660 = vmatpush3.bf16.msra.mxu1 %v8657_v60  ;;  %8158 = vmatprep.mubr.msk.f32.mxu1 %vm523_vm2, %v9585_v12  ;;  %v10172_v12 = vld [vmem:[#allocation2 + $0x88] sm:$0xff] }
 0x1dc   :  { %8662 = vmatprep.subr.bf16.mxu1 %v8661_v32  ;;  %8685 = vmatprep.subr.bf16.mxu0 %v9125_v8 }
 0x1dd   :  { %7966 = vmatmul.mubr.msk.f32.gmra.mrb[36].mxu0 %vm523_vm2, %v9714_v10 }
 0x1de   :  { %7968 = vmatprep.mubr.msk.f32.mxu0 %vm523_vm2, %v9720_v45  ;;  %8159 = vmatmul.mubr.msk.f32.gmra.mrb[4].mxu1 %vm523_vm2, %v9595_v19  ;;  %v10176_v19 = vld [vmem:[#allocation2 + $0x90] sm:$0xff] }
 0x1df   :  { %8161 = vmatprep.mubr.msk.f32.mxu1 %vm523_vm2, %v9603_v22  ;;  %v10186_v22 = vld [vmem:[#allocation2 + $0xb0] sm:$0xff] }
 0x1e1   :  { %7969 = vmatmul.mubr.msk.f32.gmra.mrb[38].mxu0 %vm523_vm2, %v9726_v11 }
 0x1e2   :  { %7971 = vmatprep.mubr.msk.f32.mxu0 %vm523_vm2, %v9732_v13  ;;  %8162 = vmatmul.mubr.msk.f32.gmra.mrb[6].mxu1 %vm523_vm2, %v9613_v29  ;;  %v4419_v29 = vld [vmem:[%s10833_s4 + $0x110] sm:$0xff] }
 0x1e3   :  { %8164 = vmatprep.mubr.msk.f32.mxu1 %vm523_vm2, %v9621_v31  ;;  %v4420_v31 = vld [vmem:[%s10833_s4 + $0x118] sm:$0xff] }
 0x1e5   :  { %7972 = vmatmul.mubr.msk.f32.gmra.mrb[40].mxu0 %vm523_vm2, %v9738_v14 }
 0x1e6   :  { %7974 = vmatprep.mubr.msk.f32.mxu0 %vm523_vm2, %v9744_v15  ;;  %8165 = vmatmul.mubr.msk.f32.gmra.mrb[8].mxu1 %vm523_vm2, %v9630_v40  ;;  %v3949_v40 = vld [vmem:[#allocation2 + $0x108] sm:$0xff] }
 0x1e7   :  { %8167 = vmatprep.mubr.msk.f32.mxu1 %vm523_vm2, %v9638_v42  ;;  %v8669_v42 = vpack.c.bf16 %v4420_v31, %v4419_v29 }
 0x1e9   :  { %7975 = vmatmul.mubr.msk.f32.gmra.mrb[42].mxu0 %vm523_vm2, %v9750_v16 }
 0x1ea   :  { %7977 = vmatprep.mubr.msk.f32.mxu0 %vm523_vm2, %v9756_v17  ;;  %8168 = vmatmul.mubr.msk.f32.gmra.mrb[10].mxu1 %vm523_vm2, %v9645_v47  ;;  %v3950_v47 = vld [vmem:[#allocation2 + $0x110] sm:$0xff] }
 0x1eb   :  { %8170 = vmatprep.mubr.msk.f32.mxu1 %vm523_vm2, %v9652_v7 }
 0x1ed   :  { %7978 = vmatmul.mubr.msk.f32.gmra.mrb[44].mxu0 %vm523_vm2, %v9762_v18 }
 0x1ee   :  { %8171 = vmatmul.mubr.msk.f32.gmra.mrb[12].mxu1 %vm523_vm2, %v9666_v52  ;;  %8383 = vmatprep.mubr.msk.f32.mxu0 %vm9126_vm3, %v9124_v48 }
 0x1ef   :  { %8173 = vmatprep.mubr.msk.f32.mxu1 %vm523_vm2, %v9675_v57 }
 0x1f2   :  { %8174 = vmatmul.mubr.msk.f32.gmra.mrb[14].mxu1 %vm523_vm2, %v9858_v33 }
 0x1f3   :  { %8176 = vmatprep.mubr.msk.f32.mxu1 %vm523_vm2, %v10005_v5 }
 0x1f6   :  { %8177 = vmatmul.mubr.msk.f32.gmra.mrb[0].mxu1 %vm523_vm2, %v10142_v36 }
 0x1f7   :  { %8183 = vmatprep.mubr.msk.f32.mxu1 %vm523_vm2, %v9708_v4  ;;  %v5377_v4 = vld [vmem:[%s10836_s7 + $0x20] sm:$0xff] }
 0x1fa   :  { %8184 = vmatmul.mubr.msk.f32.vlgmr.msra.gmra.mrb[2].mxu1 %vm523_vm2, %v9714_v10 }
 0x1fb   :  { %8664 = vmatpush3.bf16.msra.mxu1 %v8661_v32  ;;  %8186 = vmatprep.mubr.msk.f32.mxu1 %vm523_vm2, %v9720_v45 }
 0x1fc   :  { %8666 = vmatprep.subr.bf16.mxu1 %v8665_v9 }
 0x1fe   :  { %8187 = vmatmul.mubr.msk.f32.gmra.mrb[4].mxu1 %vm523_vm2, %v9726_v11 }
 0x1ff   :  { %8189 = vmatprep.mubr.msk.f32.mxu1 %vm523_vm2, %v9732_v13 }
 0x202   :  { %8190 = vmatmul.mubr.msk.f32.gmra.mrb[6].mxu1 %vm523_vm2, %v9738_v14 }
 0x203   :  { %8192 = vmatprep.mubr.msk.f32.mxu1 %vm523_vm2, %v9744_v15 }
 0x206   :  { %8193 = vmatmul.mubr.msk.f32.gmra.mrb[8].mxu1 %vm523_vm2, %v9750_v16 }
 0x207   :  { %8195 = vmatprep.mubr.msk.f32.mxu1 %vm523_vm2, %v9756_v17 }
 0x20a   :  { %8196 = vmatmul.mubr.msk.f32.gmra.mrb[10].mxu1 %vm523_vm2, %v9762_v18 }
 0x20b   :  { %8198 = vmatprep.mubr.msk.f32.mxu1 %vm523_vm2, %v10172_v12 }
 0x20e   :  { %8199 = vmatmul.mubr.msk.f32.gmra.mrb[12].mxu1 %vm523_vm2, %v10176_v19 }
 0x20f   :  { %8201 = vmatprep.mubr.msk.f32.mxu1 %vm523_vm2, %v9781_v24 }
 0x212   :  { %8202 = vmatmul.mubr.msk.f32.gmra.mrb[14].mxu1 %vm523_vm2, %v9932_v38 }
 0x213   :  { %8204 = vmatprep.mubr.msk.f32.mxu1 %vm523_vm2, %v10076_v54 }
 0x216   :  { %8205 = vmatmul.mubr.msk.f32.gmra.mrb[0].mxu1 %vm523_vm2, %v10186_v22 }
 0x217   :  { %8211 = vmatprep.mubr.msk.f32.mxu1 %vm523_vm2, %v3949_v40 }
 0x21a   :  { %8212 = vmatmul.mubr.msk.f32.vlgmr.msra.gmra.mrb[2].mxu1 %vm523_vm2, %v3950_v47 }
 0x21b   :  { %8668 = vmatpush3.bf16.msra.mxu1 %v8665_v9  ;;  %8214 = vmatprep.mubr.msk.f32.mxu1 %vm523_vm2, %v10198_v49 }
 0x21c   :  { %8670 = vmatprep.subr.bf16.mxu1 %v8669_v42 }
 0x21e   :  { %8215 = vmatmul.mubr.msk.f32.gmra.mrb[4].mxu1 %vm523_vm2, %v10202_v50 }
 0x21f   :  { %8217 = vmatprep.mubr.msk.f32.mxu1 %vm523_vm2, %v10206_v51 }
 0x222   :  { %8218 = vmatmul.mubr.msk.f32.gmra.mrb[6].mxu1 %vm523_vm2, %v10210_v59 }
 0x223   :  { %8220 = vmatprep.mubr.msk.f32.mxu1 %vm523_vm2, %v10214_v53 }
 0x226   :  { %8221 = vmatmul.mubr.msk.f32.gmra.mrb[8].mxu1 %vm523_vm2, %v10218_v56 }
 0x227   :  { %8223 = vmatprep.mubr.msk.f32.mxu1 %vm523_vm2, %v10222_v0 }
 0x22a   :  { %8224 = vmatmul.mubr.msk.f32.gmra.mrb[10].mxu1 %vm523_vm2, %v9652_v7  ;;  %v4646_v7 = vld [vmem:[%s10833_s4 + $0x120] sm:$0xff] }
 0x22b   :  { %8226 = vmatprep.mubr.msk.f32.mxu1 %vm523_vm2, %v9666_v52  ;;  %v4647_v52 = vld [vmem:[%s10833_s4 + $0x128] sm:$0xff] }
 0x22e   :  { %8227 = vmatmul.mubr.msk.f32.gmra.mrb[12].mxu1 %vm523_vm2, %v9675_v57  ;;  %v8673_v57 = vpack.c.bf16 %v4647_v52, %v4646_v7 }
 0x22f   :  { %8229 = vmatprep.mubr.msk.f32.mxu1 %vm523_vm2, %v9858_v33 }
 0x232   :  { %8230 = vmatmul.mubr.msk.f32.gmra.mrb[14].mxu1 %vm523_vm2, %v10005_v5 }
 0x233   :  { %8232 = vmatprep.mubr.msk.f32.mxu1 %vm523_vm2, %v10142_v36 }
 0x236   :  { %8233 = vmatmul.mubr.msk.f32.gmra.mrb[0].mxu1 %vm523_vm2, %v10238_v1 }
 0x237   :  { %8239 = vmatprep.mubr.msk.f32.mxu1 %vm523_vm2, %v9714_v10  ;;  %v5378_v10 = vld [vmem:[%s10836_s7 + $0x28] sm:$0xff] }
 0x23a   :  { %8240 = vmatmul.mubr.msk.f32.vlgmr.msra.gmra.mrb[2].mxu1 %vm523_vm2, %v9720_v45  ;;  %v5379_v45 = vld [vmem:[%s10836_s7 + $0x30] sm:$0xff] }
 0x23b   :  { %8672 = vmatpush3.bf16.msra.mxu1 %v8669_v42  ;;  %8242 = vmatprep.mubr.msk.f32.mxu1 %vm523_vm2, %v9726_v11  ;;  %v8677_v11 = vpack.c.bf16 %v4874_v6, %v4873_v3  ;;  %v10437_v42 = vld [vmem:[%s10838_s6] ss:$0 sm:$0xff]  ;;  %v5376_v3 = vld [vmem:[%s10836_s7 + $0x18] sm:$0xff] }
 0x23c   :  { %8674 = vmatprep.subr.bf16.mxu1 %v8673_v57 }
 0x23e   :  { %8243 = vmatmul.mubr.msk.f32.gmra.mrb[4].mxu1 %vm523_vm2, %v9732_v13  ;;  %v8686_v13 = vpack.c.bf16 %v5378_v10, %v5377_v4 }
 0x23f   :  { %8245 = vmatprep.mubr.msk.f32.mxu1 %vm523_vm2, %v9738_v14  ;;  %v5380_v14 = vld [vmem:[%s10836_s7 + $0x38] sm:$0xff] }
 0x240   :  { %8687 = vmatpush3.bf16.msra.mxu0 %v8686_v13 }
 0x241   :  { %8688 = vmatprep.subr.bf16.mxu0 %v9125_v8 }
 0x242   :  { %8246 = vmatmul.mubr.msk.f32.gmra.mrb[6].mxu1 %vm523_vm2, %v9744_v15  ;;  %v8689_v15 = vpack.c.bf16 %v5380_v14, %v5379_v45  ;;  %v5528_v14 = vld [vmem:[%s10836_s7 + $0x40] sm:$0xff] }
 0x243   :  { %8248 = vmatprep.mubr.msk.f32.mxu1 %vm523_vm2, %v9750_v16  ;;  %v4411_v16 = vld [vmem:[#allocation2 + $0x150] sm:$0xff] }
 0x244   :  { %8690 = vmatpush3.bf16.msra.mxu0 %v8689_v15  ;;  %v5529_v15 = vld [vmem:[%s10836_s7 + $0x48] sm:$0xff] }
 0x245   :  { %8691 = vmatprep.subr.bf16.mxu0 %v9125_v8  ;;  %v8698_v21 = vpack.c.bf16 %v5529_v15, %v5528_v14  ;;  %v5687_v14 = vld [vmem:[%s10836_s7 + $0x98] sm:$0xff] }
 0x246   :  { %8249 = vmatmul.mubr.msk.f32.gmra.mrb[8].mxu1 %vm523_vm2, %v9756_v17  ;;  %v4412_v17 = vld [vmem:[#allocation2 + $0x158] sm:$0xff] }
 0x247   :  { %8251 = vmatprep.mubr.msk.f32.mxu1 %vm523_vm2, %v9762_v18  ;;  %v4413_v18 = vld [vmem:[#allocation2 + $0x160] sm:$0xff] }
 0x24a   :  { %8252 = vmatmul.mubr.msk.f32.gmra.mrb[10].mxu1 %vm523_vm2, %v10172_v12 }
 0x24b   :  { %8254 = vmatprep.mubr.msk.f32.mxu1 %vm523_vm2, %v10176_v19 }
 0x24e   :  { %8255 = vmatmul.mubr.msk.f32.gmra.mrb[12].mxu1 %vm523_vm2, %v9781_v24  ;;  %v4630_v24 = vld [vmem:[#allocation2 + $0x48] sm:$0xff] }
 0x24f   :  { %8257 = vmatprep.mubr.msk.f32.mxu1 %vm523_vm2, %v9932_v38 }
 0x252   :  { %8258 = vmatmul.mubr.msk.f32.gmra.mrb[14].mxu1 %vm523_vm2, %v10076_v54 }
 0x253   :  { %8260 = vmatprep.mubr.msk.f32.mxu1 %vm523_vm2, %v10186_v22 }
 0x256   :  { %8261 = vmatmul.mubr.msk.f32.gmra.mrb[0].mxu1 %vm523_vm2, %v10278_v2 }
 0x257   :  { %8267 = vmatprep.mubr.msk.f32.mxu1 %vm523_vm2, %v3950_v47 }
 0x25a   :  { %8268 = vmatmul.mubr.msk.f32.vlgmr.msra.gmra.mrb[2].mxu1 %vm523_vm2, %v10198_v49 }
 0x25b   :  { %8676 = vmatpush3.bf16.msra.mxu1 %v8673_v57  ;;  %8270 = vmatprep.mubr.msk.f32.mxu1 %vm523_vm2, %v10202_v50 }
 0x25c   :  { %8678 = vmatprep.subr.bf16.mxu1 %v8677_v11 }
 0x25e   :  { %8271 = vmatmul.mubr.msk.f32.gmra.mrb[4].mxu1 %vm523_vm2, %v10206_v51 }
 0x25f   :  { %8273 = vmatprep.mubr.msk.f32.mxu1 %vm523_vm2, %v10210_v59 }
 0x262   :  { %8274 = vmatmul.mubr.msk.f32.gmra.mrb[6].mxu1 %vm523_vm2, %v10214_v53 }
 0x263   :  { %8276 = vmatprep.mubr.msk.f32.mxu1 %vm523_vm2, %v10218_v56 }
 0x266   :  { %8277 = vmatmul.mubr.msk.f32.gmra.mrb[8].mxu1 %vm523_vm2, %v10222_v0 }
 0x267   :  { %8279 = vmatprep.mubr.msk.f32.mxu1 %vm523_vm2, %v4411_v16 }
 0x26a   :  { %8280 = vmatmul.mubr.msk.f32.gmra.mrb[10].mxu1 %vm523_vm2, %v4412_v17 }
 0x26b   :  { %8282 = vmatprep.mubr.msk.f32.mxu1 %vm523_vm2, %v4413_v18 }
 0x26e   :  { %8283 = vmatmul.mubr.msk.f32.gmra.mrb[12].mxu1 %vm523_vm2, %v9858_v33 }
 0x26f   :  { %8285 = vmatprep.mubr.msk.f32.mxu1 %vm523_vm2, %v10005_v5 }
 0x272   :  { %8286 = vmatmul.mubr.msk.f32.gmra.mrb[14].mxu1 %vm523_vm2, %v10142_v36 }
 0x273   :  { %8288 = vmatprep.mubr.msk.f32.mxu1 %vm523_vm2, %v10238_v1 }
 0x276   :  { %8289 = vmatmul.mubr.msk.f32.gmra.mrb[0].mxu1 %vm523_vm2, %v4418_v20 }
 0x277   :  { %8295 = vmatprep.mubr.msk.f32.mxu1 %vm523_vm2, %v4630_v24 }
 0x27a   :  { %8296 = vmatmul.mubr.msk.f32.vlgmr.msra.gmra.mrb[2].mxu1 %vm523_vm2, %v4631_v26 }
 0x27b   :  { %8680 = vmatpush3.bf16.msra.mxu1 %v8677_v11  ;;  %8298 = vmatprep.mubr.msk.f32.mxu1 %vm523_vm2, %v4632_v27 }
 0x27c   :  { %8682 = vmatprep.subr.bf16.mxu1 %v8681_v25 }
 0x27e   :  { %8299 = vmatmul.mubr.msk.f32.gmra.mrb[4].mxu1 %vm523_vm2, %v4633_v28 }
 0x27f   :  { %8301 = vmatprep.mubr.msk.f32.mxu1 %vm523_vm2, %v4634_v30 }
 0x282   :  { %8302 = vmatmul.mubr.msk.f32.gmra.mrb[6].mxu1 %vm523_vm2, %v4635_v34 }
 0x283   :  { %8304 = vmatprep.mubr.msk.f32.mxu1 %vm523_vm2, %v4636_v35 }
 0x286   :  { %8305 = vmatmul.mubr.msk.f32.gmra.mrb[8].mxu1 %vm523_vm2, %v4637_v37 }
 0x287   :  { %8307 = vmatprep.mubr.msk.f32.mxu1 %vm523_vm2, %v10172_v12 }
 0x28a   :  { %8308 = vmatmul.mubr.msk.f32.gmra.mrb[10].mxu1 %vm523_vm2, %v10176_v19 }
 0x28b   :  { %8310 = vmatprep.mubr.msk.f32.mxu1 %vm523_vm2, %v4640_v58 }
 0x28e   :  { %8311 = vmatmul.mubr.msk.f32.gmra.mrb[12].mxu1 %vm523_vm2, %v9932_v38 }
 0x28f   :  { %8313 = vmatprep.mubr.msk.f32.mxu1 %vm523_vm2, %v10076_v54 }
 0x292   :  { %8314 = vmatmul.mubr.msk.f32.gmra.mrb[14].mxu1 %vm523_vm2, %v10186_v22 }
 0x293   :  { %8316 = vmatprep.mubr.msk.f32.mxu1 %vm523_vm2, %v10278_v2 }
 0x296   :  { %8317 = vmatmul.mubr.msk.f32.gmra.mrb[0].mxu1 %vm523_vm2, %v4645_v39 }
 0x297   :  { %8323 = vmatprep.mubr.msk.f32.mxu1 %vm523_vm2, %v10198_v49 }
 0x29a   :  { %8324 = vmatmul.mubr.msk.f32.vlgmr.msra.gmra.mrb[2].mxu1 %vm523_vm2, %v10202_v50  ;;  %v5373_v50 = vld [vmem:[%s10836_s7] sm:$0xff] }
 0x29b   :  { %8684 = vmatpush3.bf16.msra.mxu1 %v8681_v25  ;;  %8326 = vmatprep.mubr.msk.f32.mxu1 %vm523_vm2, %v10206_v51  ;;  %v5374_v51 = vld [vmem:[%s10836_s7 + $0x8] sm:$0xff]  ;;  %v5530_v25 = vld [vmem:[%s10836_s7 + $0x50] sm:$0xff] }
 0x29c   :  { %v8692_v7 = vpack.c.bf16 %v5374_v51, %v5373_v50 }
 0x29e   :  { %8327 = vmatmul.mubr.msk.f32.gmra.mrb[4].mxu1 %vm523_vm2, %v10210_v59 }
 0x29f   :  { %8329 = vmatprep.mubr.msk.f32.mxu1 %vm523_vm2, %v10214_v53 }
 0x2a2   :  { %8330 = vmatmul.mubr.msk.f32.gmra.mrb[6].mxu1 %vm523_vm2, %v10218_v56 }
 0x2a3   :  { %8332 = vmatprep.mubr.msk.f32.mxu1 %vm523_vm2, %v10222_v0 }
 0x2a4   :  { %v10372_v41 = vpop.f32.mrb[46].mxu0 }
 0x2a5   :  { %v10374_v43 = vpop.f32.mrb[47].mxu0 }
 0x2a6   :  { %8333 = vmatmul.mubr.msk.f32.gmra.mrb[8].mxu1 %vm523_vm2, %v4411_v16 }
 0x2a7   :  { %8335 = vmatprep.mubr.msk.f32.mxu1 %vm523_vm2, %v4412_v17 }
 0x2a8   :  { %v7961_v44 = vpop.f32.mrb[32].mxu0 }
 0x2a9   :  { %v2038_v46 = vpop.f32.mrb[33].mxu0 }
 0x2aa   :  { %8336 = vmatmul.mubr.msk.f32.gmra.mrb[10].mxu1 %vm523_vm2, %v4413_v18 }
 0x2ab   :  { %8338 = vmatprep.mubr.msk.f32.mxu1 %vm523_vm2, %v9858_v33 }
 0x2ac   :  { %v7964_v60 = vpop.f32.mrb[34].mxu0 }
 0x2ad   :  { %v2048_v61 = vpop.f32.mrb[35].mxu0 }
 0x2ae   :  { %8339 = vmatmul.mubr.msk.f32.gmra.mrb[12].mxu1 %vm523_vm2, %v10005_v5 }
 0x2af   :  { %8341 = vmatprep.mubr.msk.f32.mxu1 %vm523_vm2, %v10142_v36 }
 0x2b0   :  { %v7967_v62 = vpop.f32.mrb[36].mxu0 }
 0x2b1   :  { %v2058_v32 = vpop.f32.mrb[37].mxu0 }
 0x2b2   :  { %8342 = vmatmul.mubr.msk.f32.gmra.mrb[14].mxu1 %vm523_vm2, %v10238_v1 }
 0x2b3   :  { %8344 = vmatprep.mubr.msk.f32.mxu1 %vm523_vm2, %v4418_v20 }
 0x2b4   :  { %v10388_v63 = vpop.f32.mrb[38].mxu0 }
 0x2b5   :  { %v10390_v9 = vpop.f32.mrb[39].mxu0 }
 0x2b6   :  { %8345 = vmatmul.mubr.msk.f32.gmra.mrb[0].mxu1 %vm523_vm2, %v4872_v55 }
 0x2b7   :  { %8351 = vmatprep.mubr.msk.f32.mxu1 %vm523_vm2, %v4631_v26  ;;  %v5531_v26 = vld [vmem:[%s10836_s7 + $0x58] sm:$0xff] }
 0x2b8   :  { %v10394_v33 = vpop.f32.mrb[40].mxu0 }
 0x2b9   :  { %v10396_v5 = vpop.f32.mrb[41].mxu0 }
 0x2ba   :  { %8352 = vmatmul.mubr.msk.f32.vlgmr.msra.gmra.mrb[2].mxu1 %vm523_vm2, %v4632_v27 }
 0x2bb   :  { %8354 = vmatprep.mubr.msk.f32.mxu1 %vm523_vm2, %v4633_v28 }
 0x2bc   :  { %v10400_v36 = vpop.f32.mrb[42].mxu0 }
 0x2bd   :  { %v10402_v29 = vpop.f32.mrb[43].mxu0 }
 0x2be   :  { %8355 = vmatmul.mubr.msk.f32.gmra.mrb[4].mxu1 %vm523_vm2, %v4634_v30 }
 0x2bf   :  { %8357 = vmatprep.mubr.msk.f32.mxu1 %vm523_vm2, %v4635_v34 }
 0x2c0   :  { %v10406_v31 = vpop.f32.mrb[44].mxu0 }
 0x2c1   :  { %v10408_v40 = vpop.f32.mrb[45].mxu0 }
 0x2c2   :  { %8358 = vmatmul.mubr.msk.f32.gmra.mrb[6].mxu1 %vm523_vm2, %v4636_v35  ;;  %v8701_v35 = vpack.c.bf16 %v5531_v26, %v5530_v25 }
 0x2c3   :  { %8360 = vmatprep.mubr.msk.f32.mxu1 %vm523_vm2, %v4637_v37 }
 0x2c6   :  { %8361 = vmatmul.mubr.msk.f32.gmra.mrb[8].mxu1 %vm523_vm2, %v10172_v12  ;;  %v5099_v12 = vld [vmem:[#allocation2 + $0xc8] sm:$0xff] }
 0x2c7   :  { %8363 = vmatprep.mubr.msk.f32.mxu1 %vm523_vm2, %v10176_v19 }
 0x2ca   :  { %8364 = vmatmul.mubr.msk.f32.gmra.mrb[10].mxu1 %vm523_vm2, %v4640_v58 }
 0x2cb   :  { %8366 = vmatprep.mubr.msk.f32.mxu1 %vm523_vm2, %v9932_v38  ;;  %v10432_v38 = vld [vmem:[%s10837_s5] ss:$0 sm:$0xff] }
 0x2ce   :  { %8367 = vmatmul.mubr.msk.f32.gmra.mrb[12].mxu1 %vm523_vm2, %v10076_v54 }
 0x2cf   :  { %8369 = vmatprep.mubr.msk.f32.mxu1 %vm523_vm2, %v10186_v22 }
 0x2d2   :  { %8370 = vmatmul.mubr.msk.f32.gmra.mrb[14].mxu1 %vm523_vm2, %v10278_v2  ;;  %v5375_v2 = vld [vmem:[%s10836_s7 + $0x10] sm:$0xff] }
 0x2d3   :  { %8372 = vmatprep.mubr.msk.f32.mxu1 %vm523_vm2, %v4645_v39  ;;  %v8695_v11 = vpack.c.bf16 %v5376_v3, %v5375_v2  ;;  %v5606_v39 = vld [vmem:[%s10836_s7 + $0x60] sm:$0xff] }
 0x2d6   :  { %8373 = vmatmul.mubr.msk.f32.gmra.mrb[0].mxu1 %vm523_vm2, %v5099_v12 }
 0x38d   :  { %v8353_v19 = vpop.f32.mrb[2].mxu1 }
 0x38e   :  { %v8801_v54 = vadd.f32 %v8353_v19, %v7961_v44  ;;  %v5216_v22 = vpop.f32.mrb[3].mxu1  ;;  %v5607_v44 = vld [vmem:[%s10836_s7 + $0x68] sm:$0xff]  ;;  %v5608_v19 = vld [vmem:[%s10836_s7 + $0x70] sm:$0xff] }
 0x38f   :  { %v8802_v47 = vadd.f32 %v5216_v22, %v2038_v46 }
 0x390   :  { %v5319_v49 = vmul.f32 %v8801_v54, %v10432_v38 }
 0x391   :  { %v8356_v59 = vpop.f32.mrb[4].mxu1  ;;  %v5318_v57 = vmul.f32 %v8802_v47, %v10432_v38 }
 0x392   :  { %v5342_v53 = vadd.f32 %v10437_v42, %v5319_v49  ;;  %v8803_v56 = vadd.f32 %v8356_v59, %v7964_v60  ;;  %v5226_v0 = vpop.f32.mrb[5].mxu1 }
 0x393   :  { %v8804_v1 = vadd.f32 %v5226_v0, %v2048_v61  ;;  %v5341_v13 = vadd.f32 %v10437_v42, %v5318_v57  ;;  %v5685_v0 = vld [vmem:[%s10836_s7 + $0x88] sm:$0xff] }
 0x394   :  { %v5358_v52 = vmax.f32 %v5342_v53, 0.0 }
 0x395   :  { %v8359_v6 = vpop.f32.mrb[6].mxu1  ;;  %v5357_v23 = vmax.f32 %v5341_v13, 0.0  ;;  %v5320_v24 = vmul.f32 %v8804_v1, %v10432_v38 }
 0x396   :  { %v10454_v4 = vadd.f32 %v8359_v6, %v7967_v62  ;;  %v5236_v10 = vpop.f32.mrb[7].mxu1  ;;  %8384 = vmatmul.mubr.msk.f32.vlgmr.msra.gmra.mrb[48].mxu0 %vm5381_vm4, %v5358_v52 }
 0x397   :  { %v10457_v45 = vadd.f32 %v5236_v10, %v2058_v32  ;;  %8693 = vmatpush3.bf16.msra.mxu0 %v8692_v7  ;;  %8394 = vmatprep.mubr.msk.f32.mxu0 %vm9126_vm3, %v9124_v48  ;;  %v5343_v37 = vadd.f32 %v10437_v42, %v5320_v24 }
 0x398   :  { %8694 = vmatprep.subr.bf16.mxu0 %v9125_v8  ;;  %v5323_v25 = vmul.f32 %v10454_v4, %v10432_v38 }
 0x399   :  { %v8362_v16 = vpop.f32.mrb[8].mxu1 }
 0x39a   :  { %v10470_v17 = vadd.f32 %v8362_v16, %v10388_v63  ;;  %v5246_v18 = vpop.f32.mrb[9].mxu1  ;;  %v5346_v4 = vadd.f32 %v10437_v42, %v5323_v25  ;;  %v6311_v25 = vld [vmem:[%s10836_s7 + $0x198] sm:$0xff] }
 0x39b   :  { %v10473_v20 = vadd.f32 %v5246_v18, %v10390_v9  ;;  %8696 = vmatpush3.bf16.msra.mxu0 %v8695_v11  ;;  %v8704_v9 = vpack.c.bf16 %v5607_v44, %v5606_v39  ;;  %v5322_v11 = vmul.f32 %v10457_v45, %v10432_v38  ;;  %v5842_v44 = vld [vmem:[%s10836_s7 + $0xd0] sm:$0xff] }
 0x39c   :  { %8697 = vmatprep.subr.bf16.mxu0 %v9125_v8 }
 0x39d   :  { %v8365_v27 = vpop.f32.mrb[10].mxu1  ;;  %v5345_v18 = vadd.f32 %v10437_v42, %v5322_v11  ;;  %v5324_v39 = vmul.f32 %v10473_v20, %v10432_v38  ;;  %v5918_v20 = vld [vmem:[%s10836_s7 + $0xe0] sm:$0xff]  ;;  %v6231_v11 = vld [vmem:[%s10836_s7 + $0x168] sm:$0xff] }
 0x39e   :  { %v8809_v28 = vadd.f32 %v8365_v27, %v10394_v33  ;;  %8395 = vmatmul.mubr.msk.f32.vlgmr.msra.gmra.mrb[50].mxu0 %vm5381_vm4, %v5357_v23  ;;  %v5256_v30 = vpop.f32.mrb[11].mxu1  ;;  %v5321_v33 = vmul.f32 %v8803_v56, %v10432_v38  ;;  %v5763_v23 = vld [vmem:[%s10836_s7 + $0xa8] sm:$0xff]  ;;  %v5764_v27 = vld [vmem:[%s10836_s7 + $0xb0] sm:$0xff] }
 0x39f   :  { %v8810_v34 = vadd.f32 %v5256_v30, %v10396_v5  ;;  %8699 = vmatpush3.bf16.msra.mxu0 %v8698_v21  ;;  %8405 = vmatprep.mubr.msk.f32.mxu0 %vm9126_vm3, %v9124_v48  ;;  %v5359_v5 = vmax.f32 %v5343_v37, 0.0  ;;  %v5762_v21 = vld [vmem:[%s10836_s7 + $0xa0] sm:$0xff]  ;;  %v5361_v26 = vmax.f32 %v5345_v18, 0.0  ;;  %v6309_v18 = vld [vmem:[%s10836_s7 + $0x188] sm:$0xff] }
 0x3a0   :  { %v5327_v58 = vmul.f32 %v8809_v28, %v10432_v38  ;;  %8700 = vmatprep.subr.bf16.mxu0 %v9125_v8  ;;  %v5344_v53 = vadd.f32 %v10437_v42, %v5321_v33  ;;  %v8716_v24 = vpack.c.bf16 %v5763_v23, %v5762_v21  ;;  %v5765_v28 = vld [vmem:[%s10836_s7 + $0xb8] sm:$0xff] }
 0x3a1   :  { %v5326_v46 = vmul.f32 %v8810_v34, %v10432_v38  ;;  %v8368_v60 = vpop.f32.mrb[12].mxu1  ;;  %v8719_v30 = vpack.c.bf16 %v5765_v28, %v5764_v27  ;;  %v5840_v34 = vld [vmem:[%s10836_s7 + $0xc0] sm:$0xff]  ;;  %v6387_v27 = vld [vmem:[%s10836_s7 + $0x1a8] sm:$0xff] }
 0x3a2   :  { %v10499_v61 = vadd.f32 %v10437_v42, %v5327_v58  ;;  %v8811_v62 = vadd.f32 %v8368_v60, %v10400_v36  ;;  %v5266_v32 = vpop.f32.mrb[13].mxu1  ;;  %v5609_v36 = vld [vmem:[%s10836_s7 + $0x78] sm:$0xff]  ;;  %v5360_v10 = vmax.f32 %v5344_v53, 0.0  ;;  %v5362_v58 = vmax.f32 %v5346_v4, 0.0  ;;  %v6388_v4 = vld [vmem:[%s10836_s7 + $0x1b0] sm:$0xff] }
 0x3a3   :  { %v10503_v55 = vadd.f32 %v10437_v42, %v5326_v46  ;;  %v8812_v63 = vadd.f32 %v5266_v32, %v10402_v29  ;;  %8702 = vmatpush3.bf16.msra.mxu0 %v8701_v35  ;;  %v8707_v59 = vpack.c.bf16 %v5609_v36, %v5608_v19  ;;  %v5841_v35 = vld [vmem:[%s10836_s7 + $0xc8] sm:$0xff]  ;;  %v5843_v46 = vld [vmem:[%s10836_s7 + $0xd8] sm:$0xff] }
 0x3a4   :  { %v5329_v12 = vmul.f32 %v8811_v62, %v10432_v38  ;;  %8703 = vmatprep.subr.bf16.mxu0 %v9125_v8  ;;  %v8722_v37 = vpack.c.bf16 %v5841_v35, %v5840_v34  ;;  %v8725_v60 = vpack.c.bf16 %v5843_v46, %v5842_v44  ;;  %v5347_v62 = vadd.f32 %v10437_v42, %v5324_v39  ;;  %v5919_v32 = vld [vmem:[%s10836_s7 + $0xe8] sm:$0xff]  ;;  %v6389_v34 = vld [vmem:[%s10836_s7 + $0x1b8] sm:$0xff]  ;;  %v6466_v44 = vld [vmem:[%s10836_s7 + $0x1d0] sm:$0xff] }
 0x3a5   :  { %v5328_v54 = vmul.f32 %v8812_v63, %v10432_v38  ;;  %v8371_v29 = vpop.f32.mrb[14].mxu1  ;;  %v8728_v63 = vpack.c.bf16 %v5919_v32, %v5918_v20  ;;  %v5997_v36 = vld [vmem:[%s10836_s7 + $0x108] sm:$0xff]  ;;  %v8767_v35 = vpack.c.bf16 %v6389_v34, %v6388_v4  ;;  %v6467_v46 = vld [vmem:[%s10836_s7 + $0x1d8] sm:$0xff] }
 0x3a6   :  { %v10517_v22 = vadd.f32 %v10437_v42, %v5329_v12  ;;  %v8813_v47 = vadd.f32 %v8371_v29, %v10406_v31  ;;  %8406 = vmatmul.mubr.msk.f32.vlgmr.msra.gmra.mrb[52].mxu0 %vm5381_vm4, %v5359_v5  ;;  %v5276_v49 = vpop.f32.mrb[15].mxu1  ;;  %v5684_v31 = vld [vmem:[%s10836_s7 + $0x80] sm:$0xff]  ;;  %v5363_v33 = vmax.f32 %v5347_v62, 0.0  ;;  %v5920_v5 = vld [vmem:[%s10836_s7 + $0xf0] sm:$0xff]  ;;  %v5921_v12 = vld [vmem:[%s10836_s7 + $0xf8] sm:$0xff] }
 0x3a7   :  { %v10522_v50 = vadd.f32 %v10437_v42, %v5328_v54  ;;  %v8814_v51 = vadd.f32 %v5276_v49, %v10408_v40  ;;  %8705 = vmatpush3.bf16.msra.mxu0 %v8704_v9  ;;  %8416 = vmatprep.mubr.msk.f32.mxu0 %vm9126_vm3, %v9124_v48  ;;  %v8710_v6 = vpack.c.bf16 %v5685_v0, %v5684_v31  ;;  %v6076_v31 = vld [vmem:[%s10836_s7 + $0x130] sm:$0xff]  ;;  %v6077_v0 = vld [vmem:[%s10836_s7 + $0x138] sm:$0xff]  ;;  %v6543_v62 = vld [vmem:[%s10836_s7 + $0x1e8] sm:$0xff] }
 0x3a8   :  { %v5331_v56 = vmul.f32 %v8813_v47, %v10432_v38  ;;  %8706 = vmatprep.subr.bf16.mxu0 %v9125_v8  ;;  %v5325_v9 = vmul.f32 %v10470_v17, %v10432_v38  ;;  %v8731_v19 = vpack.c.bf16 %v5921_v12, %v5920_v5  ;;  %v5996_v17 = vld [vmem:[%s10836_s7 + $0x100] sm:$0xff]  ;;  %v5998_v47 = vld [vmem:[%s10836_s7 + $0x110] sm:$0xff]  ;;  %v5368_v23 = vmax.f32 %v10517_v22, 0.0  ;;  %v6630_v12 = vld [vmem:[%s10839_s9 + $0x8] sm:$0xff] }
 0x3a9   :  { %v5330_v40 = vmul.f32 %v8814_v51, %v10432_v38  ;;  %v8374_v1 = vpop.f32.mrb[0].mxu1  ;;  %v8734_v54 = vpack.c.bf16 %v5997_v36, %v5996_v17  ;;  %v6074_v51 = vld [vmem:[%s10836_s7 + $0x120] sm:$0xff] }
 0x3aa   :  { %v10538_v7 = vadd.f32 %v10437_v42, %v5331_v56  ;;  %v8815_v52 = vadd.f32 %v8374_v1, %v10372_v41  ;;  %v5286_v57 = vpop.f32.mrb[1].mxu1  ;;  %v5686_v41 = vld [vmem:[%s10836_s7 + $0x90] sm:$0xff]  ;;  %v5365_v56 = vmax.f32 %v10503_v55, 0.0  ;;  %v6152_v55 = vld [vmem:[%s10836_s7 + $0x140] sm:$0xff]  ;;  %v6153_v1 = vld [vmem:[%s10836_s7 + $0x148] sm:$0xff] }
 0x3ab   :  { %v10542_v2 = vadd.f32 %v10437_v42, %v5330_v40  ;;  %v8816_v3 = vadd.f32 %v5286_v57, %v10374_v43  ;;  %8708 = vmatpush3.bf16.msra.mxu0 %v8707_v59  ;;  %v8713_v16 = vpack.c.bf16 %v5687_v14, %v5686_v41  ;;  %v6075_v59 = vld [vmem:[%s10836_s7 + $0x128] sm:$0xff]  ;;  %v8743_v40 = vpack.c.bf16 %v6077_v0, %v6076_v31  ;;  %v6232_v14 = vld [vmem:[%s10836_s7 + $0x170] sm:$0xff]  ;;  %v6386_v22 = vld [vmem:[%s10836_s7 + $0x1a0] sm:$0xff] }
 0x3ac   :  { %v5333_v13 = vmul.f32 %v8815_v52, %v10432_v38  ;;  %8709 = vmatprep.subr.bf16.mxu0 %v9125_v8  ;;  %v8740_v53 = vpack.c.bf16 %v6075_v59, %v6074_v51  ;;  %v8746_v52 = vpack.c.bf16 %v6153_v1, %v6152_v55  ;;  %v5366_v57 = vmax.f32 %v10499_v61, 0.0  ;;  %v6230_v61 = vld [vmem:[%s10836_s7 + $0x160] sm:$0xff] }
 0x3ad   :  { %v5332_v43 = vmul.f32 %v8816_v3, %v10432_v38  ;;  %v5348_v38 = vadd.f32 %v10437_v42, %v5325_v9  ;;  %v6154_v3 = vld [vmem:[%s10836_s7 + $0x150] sm:$0xff]  ;;  %v5367_v41 = vmax.f32 %v10522_v50, 0.0  ;;  %v6308_v50 = vld [vmem:[%s10836_s7 + $0x180] sm:$0xff]  ;;  %v8764_v28 = vpack.c.bf16 %v6387_v27, %v6386_v22  ;;  %v6545_v9 = vld [vmem:[%s10836_s7 + $0x1f8] sm:$0xff] }
 0x3ae   :  { %v10557_v15 = vadd.f32 %v10437_v42, %v5333_v13  ;;  %8417 = vmatmul.mubr.msk.f32.vlgmr.msra.gmra.mrb[54].mxu0 %vm5381_vm4, %v5360_v10  ;;  %v8752_v13 = vpack.c.bf16 %v6231_v11, %v6230_v61  ;;  %v8758_v21 = vpack.c.bf16 %v6309_v18, %v6308_v50  ;;  %v5370_v39 = vmax.f32 %v10538_v7, 0.0  ;;  %v6542_v7 = vld [vmem:[%s10836_s7 + $0x1e0] sm:$0xff] }
 0x3af   :  { %v10561_v45 = vadd.f32 %v10437_v42, %v5332_v43  ;;  %8711 = vmatpush3.bf16.msra.mxu0 %v8710_v6  ;;  %8427 = vmatprep.mubr.msk.f32.mxu0 %vm9126_vm3, %v9124_v48  ;;  %v5364_v29 = vmax.f32 %v5348_v38, 0.0  ;;  %v5999_v42 = vld [vmem:[%s10836_s7 + $0x118] sm:$0xff]  ;;  %v8776_v20 = vpack.c.bf16 %v6543_v62, %v6542_v7  ;;  %v6629_v5 = vld [vmem:[%s10839_s9] sm:$0xff] }
 0x3b0   :  { %8712 = vmatprep.subr.bf16.mxu0 %v9125_v8  ;;  %v8737_v49 = vpack.c.bf16 %v5999_v42, %v5998_v47  ;;  %v6155_v6 = vld [vmem:[%s10836_s7 + $0x158] sm:$0xff]  ;;  %v6633_v36 = vld [vmem:[%s10839_s9 + $0x20] sm:$0xff]  ;;  %v6635_v47 = vld [vmem:[%s10839_s9 + $0x30] sm:$0xff] }
 0x3b1   :  { %v8749_v10 = vpack.c.bf16 %v6155_v6, %v6154_v3  ;;  %v6233_v43 = vld [vmem:[%s10836_s7 + $0x178] sm:$0xff]  ;;  %v5371_v32 = vmax.f32 %v10561_v45, 0.0  ;;  %v5372_v45 = vmax.f32 %v10557_v15, 0.0  ;;  %v6631_v15 = vld [vmem:[%s10839_s9 + $0x10] sm:$0xff] }
 0x3b2   :  { %v6632_v38 = vld [vmem:[%s10839_s9 + $0x18] sm:$0xff] }
 0x3b3   :  { %8714 = vmatpush3.bf16.msra.mxu0 %v8713_v16  ;;  %v8755_v16 = vpack.c.bf16 %v6233_v43, %v6232_v14  ;;  %v8785_v17 = vpack.c.bf16 %v6632_v38, %v6631_v15  ;;  %v6636_v42 = vld [vmem:[%s10839_s9 + $0x38] sm:$0xff]  ;;  %v6721_v15 = vld [vmem:[%s10841_s11 + $0x10] sm:$0xff] }
 0x3b4   :  { %8715 = vmatprep.subr.bf16.mxu0 %v9125_v8  ;;  %v6722_v38 = vld [vmem:[%s10841_s11 + $0x18] sm:$0xff] }
 0x3b6   :  { %8428 = vmatmul.mubr.msk.f32.vlgmr.msra.gmra.mrb[56].mxu0 %vm5381_vm4, %v5361_v26 }
 0x3b7   :  { %8717 = vmatpush3.bf16.msra.mxu0 %v8716_v24  ;;  %8438 = vmatprep.mubr.msk.f32.mxu0 %vm9126_vm3, %v9124_v48  ;;  %v6310_v24 = vld [vmem:[%s10836_s7 + $0x190] sm:$0xff] }
 0x3b8   :  { %8718 = vmatprep.subr.bf16.mxu0 %v9125_v8  ;;  %v8761_v26 = vpack.c.bf16 %v6311_v25, %v6310_v24 }
 0x3bb   :  { %8720 = vmatpush3.bf16.msra.mxu0 %v8719_v30  ;;  %v5369_v30 = vmax.f32 %v10542_v2, 0.0  ;;  %v6464_v2 = vld [vmem:[%s10836_s7 + $0x1c0] sm:$0xff] }
 0x3bc   :  { %8721 = vmatprep.subr.bf16.mxu0 %v9125_v8 }
 0x3be   :  { %8439 = vmatmul.mubr.msk.f32.vlgmr.msra.gmra.mrb[58].mxu0 %vm5381_vm4, %v5362_v58 }
 0x3bf   :  { %8723 = vmatpush3.bf16.msra.mxu0 %v8722_v37  ;;  %8449 = vmatprep.mubr.msk.f32.mxu0 %vm9126_vm3, %v9124_v48  ;;  %v6465_v37 = vld [vmem:[%s10836_s7 + $0x1c8] sm:$0xff] }
 0x3c0   :  { %8724 = vmatprep.subr.bf16.mxu0 %v9125_v8  ;;  %v8770_v58 = vpack.c.bf16 %v6465_v37, %v6464_v2 }
 0x3c3   :  { %8726 = vmatpush3.bf16.msra.mxu0 %v8725_v60  ;;  %v8773_v60 = vpack.c.bf16 %v6467_v46, %v6466_v44 }
 0x3c4   :  { %8727 = vmatprep.subr.bf16.mxu0 %v9125_v8 }
 0x3c6   :  { %8450 = vmatmul.mubr.msk.f32.vlgmr.msra.gmra.mrb[60].mxu0 %vm5381_vm4, %v5363_v33 }
 0x3c7   :  { %8729 = vmatpush3.bf16.msra.mxu0 %v8728_v63  ;;  %8460 = vmatprep.mubr.msk.f32.mxu0 %vm9126_vm3, %v9124_v48  ;;  %v6544_v63 = vld [vmem:[%s10836_s7 + $0x1f0] sm:$0xff] }
 0x3c8   :  { %8730 = vmatprep.subr.bf16.mxu0 %v9125_v8  ;;  %v8779_v33 = vpack.c.bf16 %v6545_v9, %v6544_v63 }
 0x3cb   :  { %8732 = vmatpush3.bf16.msra.mxu0 %v8731_v19  ;;  %v8782_v19 = vpack.c.bf16 %v6630_v12, %v6629_v5 }
 0x3cc   :  { %8733 = vmatprep.subr.bf16.mxu0 %v9125_v8 }
 0x3ce   :  { %8461 = vmatmul.mubr.msk.f32.vlgmr.msra.gmra.mrb[62].mxu0 %vm5381_vm4, %v5364_v29 }
 0x3cf   :  { %8735 = vmatpush3.bf16.msra.mxu0 %v8734_v54  ;;  %8471 = vmatprep.mubr.msk.f32.mxu0 %vm9126_vm3, %v9124_v48  ;;  %v6634_v54 = vld [vmem:[%s10839_s9 + $0x28] sm:$0xff] }
 0x3d0   :  { %8736 = vmatprep.subr.bf16.mxu0 %v9125_v8  ;;  %v8788_v29 = vpack.c.bf16 %v6634_v54, %v6633_v36  ;;  %v7198_v36 = vld [vmem:[%s10842_s10] ss:$0 sm:$0xff] }
 0x3d3   :  { %8738 = vmatpush3.bf16.msra.mxu0 %v8737_v49  ;;  %v8791_v49 = vpack.c.bf16 %v6636_v42, %v6635_v47 }
 0x3d4   :  { %8739 = vmatprep.subr.bf16.mxu0 %v9125_v8 }
 0x3d6   :  { %8472 = vmatmul.mubr.msk.f32.vlgmr.msra.gmra.mrb[64].mxu0 %vm5381_vm4, %v5365_v56 }
 0x3d7   :  { %8741 = vmatpush3.bf16.msra.mxu0 %v8740_v53  ;;  %8482 = vmatprep.mubr.msk.f32.mxu0 %vm9126_vm3, %v9124_v48 }
 0x3d8   :  { %8742 = vmatprep.subr.bf16.mxu0 %v9125_v8 }
 0x3db   :  { %8744 = vmatpush3.bf16.msra.mxu0 %v8743_v40 }
 0x3dc   :  { %8745 = vmatprep.subr.bf16.mxu0 %v9125_v8 }
 0x3de   :  { %8483 = vmatmul.mubr.msk.f32.vlgmr.msra.gmra.mrb[66].mxu0 %vm5381_vm4, %v5366_v57 }
 0x3df   :  { %8747 = vmatpush3.bf16.msra.mxu0 %v8746_v52  ;;  %8493 = vmatprep.mubr.msk.f32.mxu0 %vm9126_vm3, %v9124_v48 }
 0x3e0   :  { %8748 = vmatprep.subr.bf16.mxu0 %v9125_v8 }
 0x3e3   :  { %8750 = vmatpush3.bf16.msra.mxu0 %v8749_v10 }
 0x3e4   :  { %8751 = vmatprep.subr.bf16.mxu0 %v9125_v8 }
 0x3e6   :  { %8494 = vmatmul.mubr.msk.f32.vlgmr.msra.gmra.mrb[68].mxu0 %vm5381_vm4, %v5367_v41 }
 0x3e7   :  { %8753 = vmatpush3.bf16.msra.mxu0 %v8752_v13  ;;  %8504 = vmatprep.mubr.msk.f32.mxu0 %vm9126_vm3, %v9124_v48 }
 0x3e8   :  { %8754 = vmatprep.subr.bf16.mxu0 %v9125_v8 }
 0x3eb   :  { %8756 = vmatpush3.bf16.msra.mxu0 %v8755_v16 }
 0x3ec   :  { %8757 = vmatprep.subr.bf16.mxu0 %v9125_v8 }
 0x3ee   :  { %8505 = vmatmul.mubr.msk.f32.vlgmr.msra.gmra.mrb[70].mxu0 %vm5381_vm4, %v5368_v23 }
 0x3ef   :  { %8759 = vmatpush3.bf16.msra.mxu0 %v8758_v21  ;;  %8515 = vmatprep.mubr.msk.f32.mxu0 %vm9126_vm3, %v9124_v48 }
 0x3f0   :  { %8760 = vmatprep.subr.bf16.mxu0 %v9125_v8 }
 0x3f3   :  { %8762 = vmatpush3.bf16.msra.mxu0 %v8761_v26 }
 0x3f4   :  { %8763 = vmatprep.subr.bf16.mxu0 %v9125_v8 }
 0x3f6   :  { %8516 = vmatmul.mubr.msk.f32.vlgmr.msra.gmra.mrb[72].mxu0 %vm5381_vm4, %v5369_v30 }
 0x3f7   :  { %8765 = vmatpush3.bf16.msra.mxu0 %v8764_v28  ;;  %8526 = vmatprep.mubr.msk.f32.mxu0 %vm9126_vm3, %v9124_v48 }
 0x3f8   :  { %8766 = vmatprep.subr.bf16.mxu0 %v9125_v8 }
 0x3fb   :  { %8768 = vmatpush3.bf16.msra.mxu0 %v8767_v35 }
 0x3fc   :  { %8769 = vmatprep.subr.bf16.mxu0 %v9125_v8 }
 0x3fe   :  { %8527 = vmatmul.mubr.msk.f32.vlgmr.msra.gmra.mrb[74].mxu0 %vm5381_vm4, %v5370_v39 }
 0x3ff   :  { %8771 = vmatpush3.bf16.msra.mxu0 %v8770_v58  ;;  %8537 = vmatprep.mubr.msk.f32.mxu0 %vm9126_vm3, %v9124_v48 }
 0x400   :  { %8772 = vmatprep.subr.bf16.mxu0 %v9125_v8 }
 0x403   :  { %8774 = vmatpush3.bf16.msra.mxu0 %v8773_v60 }
 0x404   :  { %8775 = vmatprep.subr.bf16.mxu0 %v9125_v8 }
 0x406   :  { %8538 = vmatmul.mubr.msk.f32.vlgmr.msra.gmra.mrb[76].mxu0 %vm5381_vm4, %v5371_v32  ;;  %v7197_v32 = vld [vmem:[%s10840_s8] ss:$0 sm:$0xff] }
 0x407   :  { %8777 = vmatpush3.bf16.msra.mxu0 %v8776_v20  ;;  %8548 = vmatprep.mubr.msk.f32.mxu0 %vm9126_vm3, %v9124_v48 }
 0x408   :  { %8778 = vmatprep.subr.bf16.mxu0 %v9125_v8 }
 0x40b   :  { %8780 = vmatpush3.bf16.msra.mxu0 %v8779_v33  ;;  %v6719_v33 = vld [vmem:[%s10841_s11] sm:$0xff] }
 0x40c   :  { %8781 = vmatprep.subr.bf16.mxu0 %v9125_v8 }
 0x40e   :  { %8549 = vmatmul.mubr.msk.f32.vlgmr.msra.gmra.mrb[78].mxu0 %vm5381_vm4, %v5372_v45  ;;  %v6720_v45 = vld [vmem:[%s10841_s11 + $0x8] sm:$0xff] }
 0x40f   :  { %8567 = vmatprep.mubr.msk.f32.mxu0 %vm9126_vm3, %v9124_v48  ;;  %8783 = vmatpush3.bf16.msra.mxu0 %v8782_v19  ;;  %v8794_v12 = vpack.c.bf16 %v6720_v45, %v6719_v33 }
 0x410   :  { %8784 = vmatprep.subr.bf16.mxu0 %v9125_v8 }
 0x413   :  { %8786 = vmatpush3.bf16.msra.mxu0 %v8785_v17  ;;  %v8797_v17 = vpack.c.bf16 %v6722_v38, %v6721_v15 }
 0x414   :  { %8787 = vmatprep.subr.bf16.mxu0 %v9125_v8 }
 0x417   :  { %8789 = vmatpush3.bf16.msra.mxu0 %v8788_v29 }
 0x418   :  { %8790 = vmatprep.subr.bf16.mxu0 %v9125_v8 }
 0x41b   :  { %8792 = vmatpush3.bf16.msra.mxu0 %v8791_v49 }
 0x41c   :  { %8793 = vmatprep.subr.bf16.mxu0 %v9125_v8 }
 0x469   :  { %v5451_v51 = vpop.f32.mrb[48].mxu0 }
 0x46a   :  { %v8385_v59 = vpop.f32.mrb[49].mxu0 }
 0x471   :  { %v5524_v53 = vpop.f32.mrb[50].mxu0 }
 0x472   :  { %v5525_v56 = vadd.f32 %v5524_v53, %v5451_v51  ;;  %v8396_v31 = vpop.f32.mrb[51].mxu0 }
 0x479   :  { %v5601_v0 = vpop.f32.mrb[52].mxu0 }
 0x47a   :  { %v5605_v40 = vadd.f32 %v5601_v0, %v5525_v56  ;;  %v8407_v55 = vpop.f32.mrb[53].mxu0 }
 0x481   :  { %v5679_v1 = vpop.f32.mrb[54].mxu0 }
 0x482   :  { %v5683_v52 = vadd.f32 %v5679_v1, %v5605_v40  ;;  %v8418_v57 = vpop.f32.mrb[55].mxu0 }
 0x489   :  { %v5757_v3 = vpop.f32.mrb[56].mxu0 }
 0x48a   :  { %v5761_v6 = vadd.f32 %v5757_v3, %v5683_v52  ;;  %v8429_v10 = vpop.f32.mrb[57].mxu0 }
 0x491   :  { %v5835_v61 = vpop.f32.mrb[58].mxu0 }
 0x492   :  { %v5839_v11 = vadd.f32 %v5835_v61, %v5761_v6  ;;  %v8440_v13 = vpop.f32.mrb[59].mxu0 }
 0x499   :  { %v5913_v41 = vpop.f32.mrb[60].mxu0 }
 0x49a   :  { %v5917_v14 = vadd.f32 %v5913_v41, %v5839_v11  ;;  %v8451_v43 = vpop.f32.mrb[61].mxu0 }
 0x4a1   :  { %v5991_v16 = vpop.f32.mrb[62].mxu0 }
 0x4a2   :  { %v5995_v50 = vadd.f32 %v5991_v16, %v5917_v14  ;;  %v8462_v18 = vpop.f32.mrb[63].mxu0 }
 0x4a9   :  { %v6069_v21 = vpop.f32.mrb[64].mxu0 }
 0x4aa   :  { %v6073_v23 = vadd.f32 %v6069_v21, %v5995_v50  ;;  %v8473_v24 = vpop.f32.mrb[65].mxu0 }
 0x4b1   :  { %v6147_v25 = vpop.f32.mrb[66].mxu0 }
 0x4b2   :  { %v6151_v26 = vadd.f32 %v6147_v25, %v6073_v23  ;;  %v8484_v22 = vpop.f32.mrb[67].mxu0 }
 0x4b9   :  { %v6225_v27 = vpop.f32.mrb[68].mxu0 }
 0x4ba   :  { %v6229_v28 = vadd.f32 %v6225_v27, %v6151_v26  ;;  %v8495_v30 = vpop.f32.mrb[69].mxu0 }
 0x4c1   :  { %v6303_v4 = vpop.f32.mrb[70].mxu0 }
 0x4c2   :  { %v6307_v34 = vadd.f32 %v6303_v4, %v6229_v28  ;;  %v8506_v35 = vpop.f32.mrb[71].mxu0 }
 0x4c9   :  { %v6381_v2 = vpop.f32.mrb[72].mxu0 }
 0x4ca   :  { %v6385_v37 = vadd.f32 %v6381_v2, %v6307_v34  ;;  %v8517_v58 = vpop.f32.mrb[73].mxu0 }
 0x4d1   :  { %v6459_v39 = vpop.f32.mrb[74].mxu0 }
 0x4d2   :  { %v6463_v44 = vadd.f32 %v6459_v39, %v6385_v37  ;;  %v8528_v46 = vpop.f32.mrb[75].mxu0 }
 0x4d9   :  { %v6537_v60 = vpop.f32.mrb[76].mxu0 }
 0x4da   :  { %v6541_v7 = vadd.f32 %v6537_v60, %v6463_v44  ;;  %v8539_v62 = vpop.f32.mrb[77].mxu0 }
 0x4e1   :  { %v6615_v20 = vpop.f32.mrb[78].mxu0 }
 0x4e2   :  { %v6619_v63 = vadd.f32 %v6615_v20, %v6541_v7  ;;  %v8550_v9 = vpop.f32.mrb[79].mxu0 }
 0x4e4   :  { %v6627_v5 = vadd.f32 %v7197_v32, %v6619_v63 }
 0x4e6   :  { %v6628_v19 = vmax.f32 %v6627_v5, 0.0 }
 0x4e8   :  { %8568 = vmatmul.mubr.msk.f32.vlgmr.msra.gmra.mrb[80].mxu0 %vm6644_vm5, %v6628_v19 }
 0x4e9   :  { %8795 = vmatpush3.bf16.msra.mxu0 %v8794_v12  ;;  %8578 = vmatprep.mubr.msk.f32.mxu0 %vm9126_vm3, %v9124_v48 }
 0x4ea   :  { %8796 = vmatprep.subr.bf16.mxu0 %v9125_v8  ;;  %v7200_v8 = vld [vmem:[%s10843_s12] ss:$0 sm:$0xff] }
 0x4ed   :  { %8798 = vmatpush3.bf16.msra.mxu0 %v8797_v17 }
 0x5bb   :  { %v6714_v54 = vpop.f32.mrb[80].mxu0 }
 0x5bc   :  { %v6715_v29 = vadd.f32 %v7198_v36, %v6714_v54  ;;  %v8569_v47 = vpop.f32.mrb[81].mxu0 }
 0x5be   :  { %v6718_v48 = vmax.f32 %v6715_v29, 0.0 }
 0x5c0   :  { %8579 = vmatmul.mubr.msk.f32.vlgmr.msra.gmra.mrb[82].mxu0 %vm5381_vm4, %v6718_v48 }
 0x693   :  { %v6799_v42 = vpop.f32.mrb[82].mxu0 }
 0x694   :  { %v6800_v49 = vadd.f32 %v7200_v8, %v6799_v42  ;;  %v8580_v51 = vpop.f32.mrb[83].mxu0 }
 0x696   :  { %6803 = vst [vmem:[%s10844_s13] sm:$0xff] %v6800_v49 }

</bundles_post_ra>
